<compile_context>
chip_gen: v6e
topology: v6e:2x2x1
jax: 0.10.0
libtpu: 0.0.40
codegen_flags: <defaults>
</compile_context>

<pallas_src>
import jax
import jax.numpy as jnp
from jax.experimental import pallas as pl
from jax.experimental.pallas import tpu as pltpu

BN_EPS = 1e-5      # nn.BatchNorm1d default eps
NORM_EPS = 1e-12   # F.normalize default eps


# ----------------------------- kernel helpers (traced inside the kernel) -----------------------------
def _dot_bf16(x, w_ref):
    # MXU matmul: bf16 operands, f32 accumulation.
    return jnp.dot(x.astype(jnp.bfloat16), w_ref[...], preferred_element_type=jnp.float32)


def _bn_relu_per_view(h, gamma, beta, B):
    # BatchNorm1d with training-mode (biased) batch statistics, computed SEPARATELY over each
    # view's B-row slice of the stacked (2B, H) activation (each torch forward sees only one
    # view's batch), followed by affine + ReLU.  Implemented with a (2, B, H) reshape and an
    # axis=1 (sublane) reduction — no split+concat copies.  All f32 / VPU math.
    H = h.shape[-1]
    h3 = h.reshape(2, B, H)
    mu = jnp.mean(h3, axis=1, keepdims=True)
    var = jnp.mean(jnp.square(h3 - mu), axis=1, keepdims=True)
    hn = ((h3 - mu) * jax.lax.rsqrt(var + BN_EPS)).reshape(2 * B, H)
    return jnp.maximum(hn * gamma + beta, 0.0)


def _l2_normalize(x):
    # F.normalize(dim=1): x / max(||x||, eps)  ==  x * rsqrt(max(||x||^2, eps^2))
    ss = jnp.sum(x * x, axis=-1, keepdims=True)
    return x * jax.lax.rsqrt(jnp.maximum(ss, NORM_EPS * NORM_EPS))


# ----------------------------------------- the Pallas kernel -----------------------------------------
def byol_kernel(
    x1_ref, x2_ref,          # (B, in_dim) f32 : the two flattened views
    we_ref,                  # (in_dim, 2F) bf16 : packed encoder weights [online | target]
    w1p_ref,                 # (2F, 2H)  bf16 : blockdiag(proj_online.W1, proj_target.W1)
    w2p_ref,                 # (2H, 2F)  bf16 : blockdiag(proj_online.W2, proj_target.W2)
    pw1_ref, pw2_ref,        # (F, H) / (H, F) bf16 : predictor weights
    vec_ref,                 # (9, Wmax) f32 : packed bias / BN-gamma / BN-beta rows
    out_ref,                 # (1,) f32 in SMEM : scalar loss
):
    B = x1_ref.shape[0]
    twoB = 2 * B
    F2 = we_ref.shape[1]     # 2F
    H2 = w1p_ref.shape[1]    # 2H
    F = F2 // 2
    Hd = H2 // 2

    # --- stack the two views along M (single in-VMEM copy, then one encoder matmul) ---
    x = jnp.concatenate([x1_ref[...], x2_ref[...]], axis=0).astype(jnp.bfloat16)   # (2B, in_dim)

    # --- synthetic encoder stand-in: both networks fused into one (2B, in) x (in, 2F) matmul ---
    b_enc = vec_ref[0:1, :F2]
    h_enc = jnp.maximum(jnp.dot(x, we_ref[...], preferred_element_type=jnp.float32) + b_enc, 0.0)

    # --- projection heads, online|target packed block-diagonally along N (2 dots total) ---
    b1p = vec_ref[1:2, :H2]
    gp = vec_ref[2:3, :H2]
    bep = vec_ref[3:4, :H2]
    b2p = vec_ref[4:5, :F2]
    h = _dot_bf16(h_enc, w1p_ref) + b1p                  # (2B, 2H)
    h = _bn_relu_per_view(h, gp, bep, B)                 # per-view, per-branch BN stats
    zt = _dot_bf16(h, w2p_ref) + b2p                     # (2B, 2F)
    z = zt[:, :F]                                        # online projections [z(v1); z(v2)]
    t = zt[:, F:]                                        # target projections [t->v2 ; t->v1]

    # --- predictor MLPHead on the stacked online projections (2 dots) ---
    pb1 = vec_ref[5:6, :Hd]
    pg = vec_ref[6:7, :Hd]
    pbe = vec_ref[7:8, :Hd]
    pb2 = vec_ref[8:9, :F]
    hp = _dot_bf16(z, pw1_ref) + pb1
    hp = _bn_relu_per_view(hp, pg, pbe, B)
    p = _dot_bf16(hp, pw2_ref) + pb2                     # [pred_from_view_1; pred_from_view_2]

    # pair predictions with the swapped targets via an XLU sublane rotate (no concat copies):
    # rows become [targets_to_view_1 ; targets_to_view_2]
    t_paired = pltpu.roll(t, shift=B, axis=0)

    np_ = _l2_normalize(p)
    nt_ = _l2_normalize(t_paired)
    # loss = mean_B(reg(p1,t1) + reg(p2,t2)) = (2*2B - 2*sum_i <np_i, nt_i>) / B
    s = jnp.sum(np_ * nt_)
    out_ref[0] = (2.0 * twoB - 2.0 * s) * (1.0 / B)


# ------------------------------ one-time parameter packing (EMA-update time) -------------------------
def pack_params(params):
    """Pack/cast the BYOL parameters once (NOT per training step): encoder weights along N,
    the two projection heads block-diagonally, and every 1-row vector into one f32 table."""
    (we_o, be_o, ow1, ob1, og, obe, ow2, ob2,
     we_t, be_t, tw1, tb1, tg, tbe, tw2, tb2,
     pw1, pb1, pg, pbe, pw2, pb2) = params

    # target branch is torch.no_grad / forward-only
    sg = jax.lax.stop_gradient
    we_t, be_t = sg(we_t), sg(be_t)
    tw1, tb1, tg, tbe, tw2, tb2 = (sg(a) for a in (tw1, tb1, tg, tbe, tw2, tb2))

    bf16 = jnp.bfloat16
    F = ow1.shape[0]
    Hd = ow1.shape[1]

    def blockdiag(a, b):
        top = jnp.concatenate([a, jnp.zeros((a.shape[0], b.shape[1]), a.dtype)], axis=1)
        bot = jnp.concatenate([jnp.zeros((b.shape[0], a.shape[1]), b.dtype), b], axis=1)
        return jnp.concatenate([top, bot], axis=0)

    w_enc = jnp.concatenate([we_o, we_t], axis=1).astype(bf16)      # (in_dim, 2F)
    w1p = blockdiag(ow1, tw1).astype(bf16)                          # (2F, 2H)
    w2p = blockdiag(ow2, tw2).astype(bf16)                          # (2H, 2F)
    pw1b = pw1.astype(bf16)
    pw2b = pw2.astype(bf16)

    wmax = max(2 * F, 2 * Hd)

    def row(*pieces):
        v = jnp.concatenate([piece.reshape(-1) for piece in pieces], axis=0)
        return jnp.pad(v, (0, wmax - v.shape[0]))

    vecs = jnp.stack([
        row(be_o, be_t),     # 0: encoder bias         (2F)
        row(ob1, tb1),       # 1: proj W1 bias         (2H)
        row(og, tg),         # 2: proj BN gamma        (2H)
        row(obe, tbe),       # 3: proj BN beta         (2H)
        row(ob2, tb2),       # 4: proj W2 bias         (2F)
        row(pb1),            # 5: predictor W1 bias    (H)
        row(pg),             # 6: predictor BN gamma   (H)
        row(pbe),            # 7: predictor BN beta    (H)
        row(pb2),            # 8: predictor W2 bias    (F)
    ], axis=0).astype(jnp.float32)                                   # (9, Wmax)

    return (w_enc, w1p, w2p, pw1b, pw2b, vecs)


# --------------------------------------------- wrapper -----------------------------------------------
def byol_loss(batch_view_1, batch_view_2, packed_params):
    w_enc, w1p, w2p, pw1, pw2, vecs = packed_params

    B = batch_view_1.shape[0]
    assert B % 8 == 0, "per-view batch must be a multiple of 8 (sublane tile)"

    # flatten NCHW -> (B, C*H*W); no per-step concat/cast HLOs in the wrapper
    x1 = batch_view_1.reshape(B, -1)
    x2 = batch_view_2.reshape(B, -1)

    args = (x1, x2, w_enc, w1p, w2p, pw1, pw2, vecs)

    in_dim = x1.shape[1]
    twoB = 2 * B
    F2 = w_enc.shape[1]
    H2 = w1p.shape[1]
    F = F2 // 2
    Hd = H2 // 2

    bytes_accessed = int(sum(int(a.size) * a.dtype.itemsize for a in args) + 4)
    flops = int(2 * twoB * in_dim * F2            # encoder (packed online|target)
                + 2 * twoB * F2 * H2              # proj W1 (block-diag packed)
                + 2 * twoB * H2 * F2              # proj W2 (block-diag packed)
                + 2 * twoB * F * Hd               # predictor W1
                + 2 * twoB * Hd * F)              # predictor W2
    transcendentals = int(2 * (H2 + Hd) + 2 * twoB)   # BN rsqrt per (view, col) + normalize rsqrt

    # generation-aware VMEM budget (v7x has only 64 MiB/TC physical VMEM)
    try:
        vmem_cap = int(pltpu.get_tpu_info().vmem_capacity_bytes)
    except Exception:
        vmem_cap = 64 << 20
    vmem_limit = min(vmem_cap - (16 << 20), 4 * bytes_accessed + (8 << 20))
    vmem_limit = int(max(vmem_limit, 16 << 20))

    out = pl.pallas_call(
        byol_kernel,
        out_shape=jax.ShapeDtypeStruct((1,), jnp.float32),
        in_specs=[pl.BlockSpec(memory_space=pltpu.MemorySpace.VMEM)] * len(args),
        out_specs=pl.BlockSpec(memory_space=pltpu.MemorySpace.SMEM),
        compiler_params=pltpu.CompilerParams(vmem_limit_bytes=vmem_limit),
        cost_estimate=pl.CostEstimate(flops=flops, transcendentals=transcendentals,
                                      bytes_accessed=bytes_accessed),
    )(*args)
    return out[0]


# ------------------------------------- deterministic parameter init ----------------------------------
def init_params(key, in_dim, feat_dim, hidden):
    def lin(k, fan_in, fan_out):
        bound = 1.0 / jnp.sqrt(jnp.float32(fan_in))
        kw, kb = jax.random.split(k)
        w = jax.random.uniform(kw, (fan_in, fan_out), jnp.float32, -bound, bound)
        b = jax.random.uniform(kb, (1, fan_out), jnp.float32, -bound, bound)
        return w, b

    def mlp(k, din, dh, dout):
        k1, k2 = jax.random.split(k)
        w1, b1 = lin(k1, din, dh)
        g = jnp.ones((1, dh), jnp.float32)
        be = jnp.zeros((1, dh), jnp.float32)
        w2, b2 = lin(k2, dh, dout)
        return (w1, b1, g, be, w2, b2)

    k_enc, k_proj, k_pred = jax.random.split(key, 3)
    we_o, be_o = lin(k_enc, in_dim, feat_dim)
    online_proj = mlp(k_proj, feat_dim, hidden, feat_dim)
    # _initializes_target_network: target params are exact copies of online params
    we_t, be_t = we_o, be_o
    target_proj = online_proj
    predictor = mlp(k_pred, feat_dim, hidden, feat_dim)
    return (we_o, be_o) + online_proj + (we_t, be_t) + target_proj + predictor


# -------------------------------------------- pure-JAX reference -------------------------------------
def reference_loss(v1, v2, params):
    # Straightforward per-view forwards (like the torch module), with the same bf16 casting
    # at the MXU boundaries that the kernel uses.
    (we_o, be_o, ow1, ob1, og, obe, ow2, ob2,
     we_t, be_t, tw1, tb1, tg, tbe, tw2, tb2,
     pw1, pb1, pg, pbe, pw2, pb2) = params
    bf16 = jnp.bfloat16

    def lin(x, w, b):
        return jnp.dot(x.astype(bf16), w.astype(bf16),
                       preferred_element_type=jnp.float32) + b

    def bn_relu(h, g, b):
        mu = h.mean(0, keepdims=True)
        var = ((h - mu) ** 2).mean(0, keepdims=True)
        return jnp.maximum((h - mu) / jnp.sqrt(var + BN_EPS) * g + b, 0.0)

    def head(x, w1, b1, g, be, w2, b2):
        return lin(bn_relu(lin(x, w1, b1), g, be), w2, b2)

    def enc(v, we, be):
        return jnp.maximum(lin(v.reshape(v.shape[0], -1), we, be), 0.0)

    def norm(x):
        return x / jnp.maximum(jnp.linalg.norm(x, axis=1, keepdims=True), NORM_EPS)

    def reg(x, y):
        return 2.0 - 2.0 * jnp.sum(norm(x) * norm(y), axis=-1)

    z1 = head(enc(v1, we_o, be_o), ow1, ob1, og, obe, ow2, ob2)
    z2 = head(enc(v2, we_o, be_o), ow1, ob1, og, obe, ow2, ob2)
    p1 = head(z1, pw1, pb1, pg, pbe, pw2, pb2)
    p2 = head(z2, pw1, pb1, pg, pbe, pw2, pb2)
    t2 = head(enc(v1, we_t, be_t), tw1, tb1, tg, tbe, tw2, tb2)
    t1 = head(enc(v2, we_t, be_t), tw1, tb1, tg, tbe, tw2, tb2)
    return jnp.mean(reg(p1, t1) + reg(p2, t2))


if __name__ == "__main__":
    key = jax.random.PRNGKey(0)
    kp, k1, k2 = jax.random.split(key, 3)

    B, C, H, W = 8, 3, 16, 16          # small NCHW views (BN needs B >= 2; squeeze quirk avoided)
    FEAT, HIDDEN = 128, 128            # fc.in_features stand-in, mlp_hidden_size (lane-aligned)

    batch_view_1 = jax.random.normal(k1, (B, C, H, W), jnp.float32)
    batch_view_2 = jax.random.normal(k2, (B, C, H, W), jnp.float32)
    params = init_params(kp, C * H * W, FEAT, HIDDEN)
    packed = pack_params(params)       # done once at init / EMA-update time, not per step

    loss = jax.block_until_ready(byol_loss(batch_view_1, batch_view_2, packed))
    ref = reference_loss(batch_view_1, batch_view_2, params)

    assert jnp.isfinite(loss), loss
    assert jnp.allclose(loss, ref, rtol=2e-2, atol=2e-2), (loss, ref)

    print("KERNEL_OK")
</pallas_src>

<mosaic_0001>
module attributes {stable_mosaic.version = 11 : i64} {
  func.func @byol_kernel(%arg0: memref<8x768xf32, #tpu.memory_space<vmem>>, %arg1: memref<8x768xf32, #tpu.memory_space<vmem>>, %arg2: memref<768x256xbf16, #tpu.memory_space<vmem>>, %arg3: memref<256x256xbf16, #tpu.memory_space<vmem>>, %arg4: memref<256x256xbf16, #tpu.memory_space<vmem>>, %arg5: memref<128x128xbf16, #tpu.memory_space<vmem>>, %arg6: memref<128x128xbf16, #tpu.memory_space<vmem>>, %arg7: memref<9x256xf32, #tpu.memory_space<vmem>>, %arg8: memref<1xf32, #tpu.memory_space<smem>>) attributes {dimension_semantics = [], scalar_prefetch = 0 : i64, scratch_operands = 0 : i64, tpu.core_type = #tpu.core_type<tc>} {
    %c0 = arith.constant 0 : index
    %c0_0 = arith.constant 0 : index
    %0 = vector.load %arg0[%c0, %c0_0] : memref<8x768xf32, #tpu.memory_space<vmem>>, vector<8x768xf32>
    %c0_1 = arith.constant 0 : index
    %c0_2 = arith.constant 0 : index
    %1 = vector.load %arg1[%c0_1, %c0_2] : memref<8x768xf32, #tpu.memory_space<vmem>>, vector<8x768xf32>
    %2 = tpu.concatenate %0, %1 in 0 : vector<8x768xf32>, vector<8x768xf32> -> vector<16x768xf32>
    %3 = arith.truncf %2 : vector<16x768xf32> to vector<16x768xbf16>
    %c0_3 = arith.constant 0 : index
    %c0_4 = arith.constant 0 : index
    %4 = vector.load %arg7[%c0_3, %c0_4] : memref<9x256xf32, #tpu.memory_space<vmem>>, vector<1x256xf32>
    %c0_5 = arith.constant 0 : index
    %c0_6 = arith.constant 0 : index
    %5 = vector.load %arg2[%c0_5, %c0_6] : memref<768x256xbf16, #tpu.memory_space<vmem>>, vector<768x256xbf16>
    %cst = arith.constant dense<0.000000e+00> : vector<16x256xf32>
    %6 = tpu.matmul %3, %5, %cst {dimension_numbers = #tpu.dot_dimension_numbers<[1], [0], [0], [1], [0, 0, 1, 1], [], []>} : vector<16x768xbf16>, vector<768x256xbf16>, vector<16x256xf32> -> vector<16x256xf32>
    %7 = vector.broadcast %4 : vector<1x256xf32> to vector<16x256xf32>
    %8 = arith.addf %6, %7 : vector<16x256xf32>
    %cst_7 = arith.constant 0.000000e+00 : f32
    %9 = vector.broadcast %cst_7 : f32 to vector<16x256xf32>
    %10 = arith.maximumf %8, %9 : vector<16x256xf32>
    %c1 = arith.constant 1 : index
    %c0_8 = arith.constant 0 : index
    %11 = vector.load %arg7[%c1, %c0_8] : memref<9x256xf32, #tpu.memory_space<vmem>>, vector<1x256xf32>
    %c2 = arith.constant 2 : index
    %c0_9 = arith.constant 0 : index
    %12 = vector.load %arg7[%c2, %c0_9] : memref<9x256xf32, #tpu.memory_space<vmem>>, vector<1x256xf32>
    %c3 = arith.constant 3 : index
    %c0_10 = arith.constant 0 : index
    %13 = vector.load %arg7[%c3, %c0_10] : memref<9x256xf32, #tpu.memory_space<vmem>>, vector<1x256xf32>
    %c4 = arith.constant 4 : index
    %c0_11 = arith.constant 0 : index
    %14 = vector.load %arg7[%c4, %c0_11] : memref<9x256xf32, #tpu.memory_space<vmem>>, vector<1x256xf32>
    %15 = arith.truncf %10 : vector<16x256xf32> to vector<16x256xbf16>
    %c0_12 = arith.constant 0 : index
    %c0_13 = arith.constant 0 : index
    %16 = vector.load %arg3[%c0_12, %c0_13] : memref<256x256xbf16, #tpu.memory_space<vmem>>, vector<256x256xbf16>
    %cst_14 = arith.constant dense<0.000000e+00> : vector<16x256xf32>
    %17 = tpu.matmul %15, %16, %cst_14 {dimension_numbers = #tpu.dot_dimension_numbers<[1], [0], [0], [1], [0, 0, 1, 1], [], []>} : vector<16x256xbf16>, vector<256x256xbf16>, vector<16x256xf32> -> vector<16x256xf32>
    %18 = vector.broadcast %11 : vector<1x256xf32> to vector<16x256xf32>
    %19 = arith.addf %17, %18 : vector<16x256xf32>
    %20 = vector.shape_cast %19 : vector<16x256xf32> to vector<2x8x256xf32>
    %cst_15 = arith.constant dense<0.000000e+00> : vector<2x256xf32>
    %21 = vector.multi_reduction <add>, %20, %cst_15 [1] : vector<2x8x256xf32> to vector<2x256xf32>
    %22 = vector.shape_cast %21 : vector<2x256xf32> to vector<2x1x256xf32>
    %cst_16 = arith.constant 8.000000e+00 : f32
    %23 = vector.broadcast %cst_16 : f32 to vector<2x1x256xf32>
    %24 = arith.divf %22, %23 : vector<2x1x256xf32>
    %25 = vector.broadcast %24 : vector<2x1x256xf32> to vector<2x8x256xf32>
    %26 = arith.subf %20, %25 : vector<2x8x256xf32>
    %27 = arith.mulf %26, %26 : vector<2x8x256xf32>
    %cst_17 = arith.constant dense<0.000000e+00> : vector<2x256xf32>
    %28 = vector.multi_reduction <add>, %27, %cst_17 [1] : vector<2x8x256xf32> to vector<2x256xf32>
    %29 = vector.shape_cast %28 : vector<2x256xf32> to vector<2x1x256xf32>
    %cst_18 = arith.constant 8.000000e+00 : f32
    %30 = vector.broadcast %cst_18 : f32 to vector<2x1x256xf32>
    %31 = arith.divf %29, %30 : vector<2x1x256xf32>
    %32 = vector.broadcast %24 : vector<2x1x256xf32> to vector<2x8x256xf32>
    %33 = arith.subf %20, %32 : vector<2x8x256xf32>
    %cst_19 = arith.constant 9.99999974E-6 : f32
    %34 = vector.broadcast %cst_19 : f32 to vector<2x1x256xf32>
    %35 = arith.addf %31, %34 : vector<2x1x256xf32>
    %36 = math.rsqrt %35 : vector<2x1x256xf32>
    %37 = vector.broadcast %36 : vector<2x1x256xf32> to vector<2x8x256xf32>
    %38 = arith.mulf %33, %37 : vector<2x8x256xf32>
    %39 = vector.shape_cast %38 : vector<2x8x256xf32> to vector<16x256xf32>
    %40 = vector.broadcast %12 : vector<1x256xf32> to vector<16x256xf32>
    %41 = arith.mulf %39, %40 : vector<16x256xf32>
    %42 = vector.broadcast %13 : vector<1x256xf32> to vector<16x256xf32>
    %43 = arith.addf %41, %42 : vector<16x256xf32>
    %cst_20 = arith.constant 0.000000e+00 : f32
    %44 = vector.broadcast %cst_20 : f32 to vector<16x256xf32>
    %45 = arith.maximumf %43, %44 : vector<16x256xf32>
    %46 = arith.truncf %45 : vector<16x256xf32> to vector<16x256xbf16>
    %c0_21 = arith.constant 0 : index
    %c0_22 = arith.constant 0 : index
    %47 = vector.load %arg4[%c0_21, %c0_22] : memref<256x256xbf16, #tpu.memory_space<vmem>>, vector<256x256xbf16>
    %cst_23 = arith.constant dense<0.000000e+00> : vector<16x256xf32>
    %48 = tpu.matmul %46, %47, %cst_23 {dimension_numbers = #tpu.dot_dimension_numbers<[1], [0], [0], [1], [0, 0, 1, 1], [], []>} : vector<16x256xbf16>, vector<256x256xbf16>, vector<16x256xf32> -> vector<16x256xf32>
    %49 = vector.broadcast %14 : vector<1x256xf32> to vector<16x256xf32>
    %50 = arith.addf %48, %49 : vector<16x256xf32>
    %51 = vector.extract_strided_slice %50 {offsets = [0, 0], sizes = [16, 128], strides = [1, 1]} : vector<16x256xf32> to vector<16x128xf32>
    %52 = vector.extract_strided_slice %50 {offsets = [0, 128], sizes = [16, 128], strides = [1, 1]} : vector<16x256xf32> to vector<16x128xf32>
    %c5 = arith.constant 5 : index
    %c0_24 = arith.constant 0 : index
    %53 = vector.load %arg7[%c5, %c0_24] : memref<9x256xf32, #tpu.memory_space<vmem>>, vector<1x128xf32>
    %c6 = arith.constant 6 : index
    %c0_25 = arith.constant 0 : index
    %54 = vector.load %arg7[%c6, %c0_25] : memref<9x256xf32, #tpu.memory_space<vmem>>, vector<1x128xf32>
    %c7 = arith.constant 7 : index
    %c0_26 = arith.constant 0 : index
    %55 = vector.load %arg7[%c7, %c0_26] : memref<9x256xf32, #tpu.memory_space<vmem>>, vector<1x128xf32>
    %c8 = arith.constant 8 : index
    %c0_27 = arith.constant 0 : index
    %56 = vector.load %arg7[%c8, %c0_27] : memref<9x256xf32, #tpu.memory_space<vmem>>, vector<1x128xf32>
    %57 = arith.truncf %51 : vector<16x128xf32> to vector<16x128xbf16>
    %c0_28 = arith.constant 0 : index
    %c0_29 = arith.constant 0 : index
    %58 = vector.load %arg5[%c0_28, %c0_29] : memref<128x128xbf16, #tpu.memory_space<vmem>>, vector<128x128xbf16>
    %cst_30 = arith.constant dense<0.000000e+00> : vector<16x128xf32>
    %59 = tpu.matmul %57, %58, %cst_30 {dimension_numbers = #tpu.dot_dimension_numbers<[1], [0], [0], [1], [0, 0, 1, 1], [], []>} : vector<16x128xbf16>, vector<128x128xbf16>, vector<16x128xf32> -> vector<16x128xf32>
    %60 = vector.broadcast %53 : vector<1x128xf32> to vector<16x128xf32>
    %61 = arith.addf %59, %60 : vector<16x128xf32>
    %62 = vector.shape_cast %61 : vector<16x128xf32> to vector<2x8x128xf32>
    %cst_31 = arith.constant dense<0.000000e+00> : vector<2x128xf32>
    %63 = vector.multi_reduction <add>, %62, %cst_31 [1] : vector<2x8x128xf32> to vector<2x128xf32>
    %64 = vector.shape_cast %63 : vector<2x128xf32> to vector<2x1x128xf32>
    %cst_32 = arith.constant 8.000000e+00 : f32
    %65 = vector.broadcast %cst_32 : f32 to vector<2x1x128xf32>
    %66 = arith.divf %64, %65 : vector<2x1x128xf32>
    %67 = vector.broadcast %66 : vector<2x1x128xf32> to vector<2x8x128xf32>
    %68 = arith.subf %62, %67 : vector<2x8x128xf32>
    %69 = arith.mulf %68, %68 : vector<2x8x128xf32>
    %cst_33 = arith.constant dense<0.000000e+00> : vector<2x128xf32>
    %70 = vector.multi_reduction <add>, %69, %cst_33 [1] : vector<2x8x128xf32> to vector<2x128xf32>
    %71 = vector.shape_cast %70 : vector<2x128xf32> to vector<2x1x128xf32>
    %cst_34 = arith.constant 8.000000e+00 : f32
    %72 = vector.broadcast %cst_34 : f32 to vector<2x1x128xf32>
    %73 = arith.divf %71, %72 : vector<2x1x128xf32>
    %74 = vector.broadcast %66 : vector<2x1x128xf32> to vector<2x8x128xf32>
    %75 = arith.subf %62, %74 : vector<2x8x128xf32>
    %cst_35 = arith.constant 9.99999974E-6 : f32
    %76 = vector.broadcast %cst_35 : f32 to vector<2x1x128xf32>
    %77 = arith.addf %73, %76 : vector<2x1x128xf32>
    %78 = math.rsqrt %77 : vector<2x1x128xf32>
    %79 = vector.broadcast %78 : vector<2x1x128xf32> to vector<2x8x128xf32>
    %80 = arith.mulf %75, %79 : vector<2x8x128xf32>
    %81 = vector.shape_cast %80 : vector<2x8x128xf32> to vector<16x128xf32>
    %82 = vector.broadcast %54 : vector<1x128xf32> to vector<16x128xf32>
    %83 = arith.mulf %81, %82 : vector<16x128xf32>
    %84 = vector.broadcast %55 : vector<1x128xf32> to vector<16x128xf32>
    %85 = arith.addf %83, %84 : vector<16x128xf32>
    %cst_36 = arith.constant 0.000000e+00 : f32
    %86 = vector.broadcast %cst_36 : f32 to vector<16x128xf32>
    %87 = arith.maximumf %85, %86 : vector<16x128xf32>
    %88 = arith.truncf %87 : vector<16x128xf32> to vector<16x128xbf16>
    %c0_37 = arith.constant 0 : index
    %c0_38 = arith.constant 0 : index
    %89 = vector.load %arg6[%c0_37, %c0_38] : memref<128x128xbf16, #tpu.memory_space<vmem>>, vector<128x128xbf16>
    %cst_39 = arith.constant dense<0.000000e+00> : vector<16x128xf32>
    %90 = tpu.matmul %88, %89, %cst_39 {dimension_numbers = #tpu.dot_dimension_numbers<[1], [0], [0], [1], [0, 0, 1, 1], [], []>} : vector<16x128xbf16>, vector<128x128xbf16>, vector<16x128xf32> -> vector<16x128xf32>
    %91 = vector.broadcast %56 : vector<1x128xf32> to vector<16x128xf32>
    %92 = arith.addf %90, %91 : vector<16x128xf32>
    %c8_i32 = arith.constant 8 : i32
    %93 = tpu.dynamic_rotate %52 by %c8_i32 dim 0 : vector<16x128xf32>, i32 -> vector<16x128xf32>
    %94 = arith.mulf %92, %92 : vector<16x128xf32>
    %cst_40 = arith.constant dense<0.000000e+00> : vector<16xf32>
    %95 = vector.multi_reduction <add>, %94, %cst_40 [1] : vector<16x128xf32> to vector<16xf32>
    %96 = vector.shape_cast %95 : vector<16xf32> to vector<16x1xf32>
    %cst_41 = arith.constant 1.000000e-24 : f32
    %97 = vector.broadcast %cst_41 : f32 to vector<16x1xf32>
    %98 = arith.maximumf %96, %97 : vector<16x1xf32>
    %99 = math.rsqrt %98 : vector<16x1xf32>
    %100 = vector.broadcast %99 : vector<16x1xf32> to vector<16x128xf32>
    %101 = arith.mulf %92, %100 : vector<16x128xf32>
    %102 = arith.mulf %93, %93 : vector<16x128xf32>
    %cst_42 = arith.constant dense<0.000000e+00> : vector<16xf32>
    %103 = vector.multi_reduction <add>, %102, %cst_42 [1] : vector<16x128xf32> to vector<16xf32>
    %104 = vector.shape_cast %103 : vector<16xf32> to vector<16x1xf32>
    %cst_43 = arith.constant 1.000000e-24 : f32
    %105 = vector.broadcast %cst_43 : f32 to vector<16x1xf32>
    %106 = arith.maximumf %104, %105 : vector<16x1xf32>
    %107 = math.rsqrt %106 : vector<16x1xf32>
    %108 = vector.broadcast %107 : vector<16x1xf32> to vector<16x128xf32>
    %109 = arith.mulf %93, %108 : vector<16x128xf32>
    %110 = arith.mulf %101, %109 : vector<16x128xf32>
    %111 = vector.shape_cast %110 : vector<16x128xf32> to vector<1x16x128xf32>
    %cst_44 = arith.constant dense<0.000000e+00> : vector<1xf32>
    %112 = vector.multi_reduction <add>, %111, %cst_44 [1, 2] : vector<1x16x128xf32> to vector<1xf32>
    %113 = vector.shape_cast %112 : vector<1xf32> to vector<1x1x1xf32>
    %114 = vector.extract %113[0, 0, 0] : f32 from vector<1x1x1xf32>
    %cst_45 = arith.constant 2.000000e+00 : f32
    %115 = arith.mulf %cst_45, %114 : f32
    %cst_46 = arith.constant 3.200000e+01 : f32
    %116 = arith.subf %cst_46, %115 : f32
    %cst_47 = arith.constant 1.250000e-01 : f32
    %117 = arith.mulf %116, %cst_47 : f32
    %c0_48 = arith.constant 0 : index
    %118 = memref.load %arg8[%c0_48] : memref<1xf32, #tpu.memory_space<smem>>
    memref.store %117, %arg8[%c0_48] : memref<1xf32, #tpu.memory_space<smem>>
    return
  }
}

</mosaic_0001>

<bundles_post_ra>
// kernel: tpu_custom_call.1
= control target key start
LH: loop header
LB: loop body
LE: loop exit
PB: predicated region body
PF: predicated region fallthrough
CT: control target
= control target key end

     0   :  { %13 = vsyncpa [#allocation3], 0  ;;  %s2666_s0 = inlined_call_operand.hbm [shape: f32[8,768], index: 0, kind: input, shape index: {}]   ;;  %s2667_s1 = inlined_call_operand.hbm [shape: f32[8,768], index: 1, kind: input, shape index: {}]   ;;  %s2668_s2 = inlined_call_operand.hbm [shape: bf16[768,256], index: 2, kind: input, shape index: {}]   ;;  %s2669_s3 = inlined_call_operand.hbm [shape: bf16[256,256], index: 3, kind: input, shape index: {}]   ;;  %s2670_s4 = inlined_call_operand.hbm [shape: bf16[256,256], index: 4, kind: input, shape index: {}]   ;;  %s2671_s5 = inlined_call_operand.hbm [shape: bf16[128,128], index: 5, kind: input, shape index: {}]   ;;  %s2672_s6 = inlined_call_operand.hbm [shape: bf16[128,128], index: 6, kind: input, shape index: {}]   ;;  %s2673_s7 = inlined_call_operand.hbm [shape: f32[9,256], index: 7, kind: input, shape index: {}]   ;;  %s2674_s8 = inlined_call_operand.hbm [shape: f32[1], index: 8, kind: output, shape index: {}]  }
   0x1   :  { %14 = vsyncpa [#allocation6], 0 }
   0x2   :  { %15 = vsyncpa [#allocation9], 0 }
   0x3   :  { %16 = vsyncpa [#allocation12], 0 }
   0x4   :  { %17 = vsyncpa [#allocation15], 0 }
   0x5   :  { %18 = vsyncpa [#allocation4], 0  ;;  %s2518_s27 = smov [#allocation5]  }
   0x6   :  { %s35_s28 = sshll.u32 %s2518_s27, 4  ;;  %s36_s28 = int_to_ptr.vmem [resolvable:$true] %s35_s28 }
   0x7   :  { %s2346_s29 = scalar_lea.vmem %s36_s28, 768  ;;  %p2351_p1 = scmp.lt.s32.totalorder %s36_s28, %s36_s28 }
   0x8   :  { %p2347_p0 = scmp.ne.s32.totalorder %s36_s28, %s2346_s29  ;;  %p2352_p2 = scmp.lt.s32.totalorder %s2346_s29, %s2346_s29 }
   0xa   :  { %p2353_p3 = por %p2352_p2, %p2351_p1 }
   0xc   :  { %p2354_p4 = pnand %p2353_p3, %p2347_p0 }
   0xe   :  { %2357 = shalt.err (!%p2354_p4)
}
   0xf   :  { %38 = dma.hbm_to_vmem [thread:$0]  %s2667_s1, 768, %s36_s28, [#allocation6]  }
  0x10   :  { %s2519_s10 = smov [#allocation8]   ;;  %s2520_s12 = smov [#allocation11]  }
  0x11   :  { %s56_s11 = sshll.u32 %s2519_s10, 4  ;;  %s80_s13 = sshll.u32 %s2520_s12, 4  ;;  %s57_s11 = int_to_ptr.vmem [resolvable:$true] %s56_s11  ;;  %s81_s13 = int_to_ptr.vmem [resolvable:$true] %s80_s13 }
  0x12   :  { %s2366_s14 = scalar_lea.vmem %s57_s11, 4096  ;;  %p2371_p6 = scmp.lt.s32.totalorder %s57_s11, %s57_s11 }
  0x13   :  { %p2367_p5 = scmp.ne.s32.totalorder %s57_s11, %s2366_s14  ;;  %p2372_p7 = scmp.lt.s32.totalorder %s2366_s14, %s2366_s14 }
  0x15   :  { %p2373_p8 = por %p2372_p7, %p2371_p6 }
  0x17   :  { %p2374_p9 = pnand %p2373_p8, %p2367_p5 }
  0x19   :  { %2377 = shalt.err (!%p2374_p9)
}
  0x1a   :  { %s2521_s15 = smov 128   ;;  %s2522_s16 = smov 8  }
  0x1b   :  { %62 = dma.hbm_to_vmem [thread:$0]  %s2669_s3, 4096, %s57_s11, [#allocation9], %s2521_s15, %s2521_s15, %s2522_s16  }
  0x1c   :  { %s2386_s1 = scalar_lea.vmem %s81_s13, 1024  ;;  %p2391_p11 = scmp.lt.s32.totalorder %s81_s13, %s81_s13 }
  0x1d   :  { %p2387_p10 = scmp.ne.s32.totalorder %s81_s13, %s2386_s1  ;;  %p2392_p12 = scmp.lt.s32.totalorder %s2386_s1, %s2386_s1 }
  0x1f   :  { %p2393_p13 = por %p2392_p12, %p2391_p11 }
  0x21   :  { %p2394_p0 = pnand %p2393_p13, %p2387_p10 }
  0x23   :  { %2397 = shalt.err (!%p2394_p0)
}
  0x24   :  { %s2523_s19 = smov 64   ;;  %s2524_s20 = smov 4  }
  0x25   :  { %86 = dma.hbm_to_vmem [thread:$0]  %s2671_s5, 1024, %s81_s13, [#allocation12], %s2523_s19, %s2523_s19, %s2524_s20  }
  0x26   :  { %s2525_s23 = smov [#allocation2]   ;;  %s2526_s3 = smov [#allocation7]  }
  0x27   :  { %s25_s24 = sshll.u32 %s2525_s23, 4  ;;  %s44_s25 = sshll.u32 %s2526_s3, 4  ;;  %s26_s24 = int_to_ptr.vmem [resolvable:$true] %s25_s24  ;;  %s45_s25 = int_to_ptr.vmem [resolvable:$true] %s44_s25 }
  0x28   :  { %s2406_s26 = scalar_lea.vmem %s26_s24, 768  ;;  %p2411_p2 = scmp.lt.s32.totalorder %s26_s24, %s26_s24 }
  0x29   :  { %p2407_p1 = scmp.ne.s32.totalorder %s26_s24, %s2406_s26  ;;  %p2412_p3 = scmp.lt.s32.totalorder %s2406_s26, %s2406_s26 }
  0x2b   :  { %p2413_p4 = por %p2412_p3, %p2411_p2 }
  0x2d   :  { %p2414_p5 = pnand %p2413_p4, %p2407_p1 }
  0x2f   :  { %2417 = shalt.err (!%p2414_p5)
}
  0x30   :  { %28 = dma.hbm_to_vmem [thread:$0]  %s2666_s0, 768, %s26_s24, [#allocation3]  }
  0x31   :  { %s2426_s29 = scalar_lea.vmem %s45_s25, 12288  ;;  %p2431_p7 = scmp.lt.s32.totalorder %s45_s25, %s45_s25 }
  0x32   :  { %p2427_p6 = scmp.ne.s32.totalorder %s45_s25, %s2426_s29  ;;  %p2432_p8 = scmp.lt.s32.totalorder %s2426_s29, %s2426_s29 }
  0x34   :  { %p2433_p9 = por %p2432_p8, %p2431_p7 }
  0x36   :  { %p2434_p10 = pnand %p2433_p9, %p2427_p6 }
  0x38   :  { %2437 = shalt.err (!%p2434_p10)
}
  0x39   :  { %50 = dma.hbm_to_vmem [thread:$0]  %s2668_s2, 12288, %s45_s25, [#allocation6], %s2521_s15, %s2521_s15, %s2522_s16  }
  0x3a   :  { %s2527_s9 = smov [#allocation10]   ;;  %s2528_s11 = smov [#allocation13]  }
  0x3b   :  { %s68_s10 = sshll.u32 %s2527_s9, 4  ;;  %s92_s0 = sshll.u32 %s2528_s11, 4  ;;  %s69_s10 = int_to_ptr.vmem [resolvable:$true] %s68_s10  ;;  %s93_s0 = int_to_ptr.vmem [resolvable:$true] %s92_s0 }
  0x3c   :  { %s2446_s12 = scalar_lea.vmem %s69_s10, 4096  ;;  %p2451_p12 = scmp.lt.s32.totalorder %s69_s10, %s69_s10 }
  0x3d   :  { %p2447_p11 = scmp.ne.s32.totalorder %s69_s10, %s2446_s12  ;;  %p2452_p13 = scmp.lt.s32.totalorder %s2446_s12, %s2446_s12 }
  0x3f   :  { %p2453_p0 = por %p2452_p13, %p2451_p12 }
  0x41   :  { %p2454_p1 = pnand %p2453_p0, %p2447_p11 }
  0x43   :  { %2457 = shalt.err (!%p2454_p1)
}
  0x44   :  { %74 = dma.hbm_to_vmem [thread:$0]  %s2670_s4, 4096, %s69_s10, [#allocation9], %s2521_s15, %s2521_s15, %s2522_s16  }
  0x45   :  { %s2466_s2 = scalar_lea.vmem %s93_s0, 1024  ;;  %p2471_p3 = scmp.lt.s32.totalorder %s93_s0, %s93_s0 }
  0x46   :  { %p2467_p2 = scmp.ne.s32.totalorder %s93_s0, %s2466_s2  ;;  %p2472_p4 = scmp.lt.s32.totalorder %s2466_s2, %s2466_s2 }
  0x48   :  { %p2473_p5 = por %p2472_p4, %p2471_p3 }
  0x4a   :  { %p2474_p6 = pnand %p2473_p5, %p2467_p2 }
  0x4c   :  { %2477 = shalt.err (!%p2474_p6)
}
  0x4d   :  { %98 = dma.hbm_to_vmem [thread:$0]  %s2672_s6, 1024, %s93_s0, [#allocation12], %s2523_s19, %s2523_s19, %s2524_s20  }
  0x4e   :  { %s2529_s1 = smov [#allocation14]  }
  0x4f   :  { %s104_s21 = sshll.u32 %s2529_s1, 4  ;;  %s105_s21 = int_to_ptr.vmem [resolvable:$true] %s104_s21 }
  0x50   :  { %s2486_s22 = scalar_lea.vmem %s105_s21, 512  ;;  %p2491_p8 = scmp.lt.s32.totalorder %s105_s21, %s105_s21 }
  0x51   :  { %p2487_p7 = scmp.ne.s32.totalorder %s105_s21, %s2486_s22  ;;  %p2492_p9 = scmp.lt.s32.totalorder %s2486_s22, %s2486_s22 }
  0x53   :  { %p2493_p10 = por %p2492_p9, %p2491_p8 }
  0x55   :  { %p2494_p11 = pnand %p2493_p10, %p2487_p7 }
  0x57   :  { %2497 = shalt.err (!%p2494_p11)
}
  0x58   :  { %s2530_s4 = smov 256   ;;  %s2531_s15 = smov 16  }
  0x59   :  { %110 = dma.hbm_to_vmem [thread:$0]  %s2673_s7, 512, %s105_s21, [#allocation15], %s2530_s4, %s2530_s4, %s2531_s15  }
  0x5a   :  { %2506 = dma.done.wait [#allocation3], 768  }
  0x5b   :  { %2507 = vsyncadd [#allocation3], 4294966528 }
  0x5c   :  { %2508 = dma.done.wait [#allocation6], 13056  }
  0x5d   :  { %2509 = vsyncadd [#allocation6], 4294954240 }
  0x5e   :  { %2510 = dma.done.wait [#allocation9], 8192  }
  0x5f   :  { %2511 = vsyncadd [#allocation9], 4294959104 }
  0x60   :  { %2512 = dma.done.wait [#allocation12], 2048  }
  0x61   :  { %2513 = vsyncadd [#allocation12], 4294965248 }
  0x62   :  { %2514 = dma.done.wait [#allocation15], 512  }
  0x63   :  { %2515 = vsyncadd [#allocation15], 4294966784  ;;  %v2062_v0 = vld [vmem:[#allocation7 + $0x74] ss:$8 sps:$4 sm:$0xff]   ;;  %v2064_v1 = vld [vmem:[#allocation7 + $0x70] ss:$8 sps:$4 sm:$0xff]  }
  0x64   :  { %742 = vmatprep.subr.bf16.mxu0 %v2062_v0  ;;  %v2065_v2 = vld [vmem:[#allocation7 + $0x174] ss:$8 sps:$4 sm:$0xff]   ;;  %v2067_v3 = vld [vmem:[#allocation7 + $0x170] ss:$8 sps:$4 sm:$0xff]   ;;  %v2068_v4 = vld [vmem:[#allocation7 + $0x64] ss:$8 sps:$4 sm:$0xff]  }
  0x65   :  { %743 = vmatpush1.bf16.msra.mxu0 %v2064_v1  ;;  %v2070_v5 = vld [vmem:[#allocation7 + $0x60] ss:$8 sps:$4 sm:$0xff]   ;;  %785 = vmatprep.subr.bf16.mxu1 %v2065_v2  ;;  %v2071_v6 = vld [vmem:[#allocation7 + $0x164] ss:$8 sps:$4 sm:$0xff]   ;;  %v2074_v8 = vld [vmem:[#allocation7 + $0x54] ss:$8 sps:$4 sm:$0xff]  }
  0x66   :  { %786 = vmatpush1.bf16.msra.mxu1 %v2067_v3  ;;  %744 = vmatprep.subr.bf16.mxu0 %v2068_v4  ;;  %v2073_v7 = vld [vmem:[#allocation7 + $0x160] ss:$8 sps:$4 sm:$0xff]   ;;  %v2076_v9 = vld [vmem:[#allocation7 + $0x50] ss:$8 sps:$4 sm:$0xff]   ;;  %v2077_v10 = vld [vmem:[#allocation7 + $0x154] ss:$8 sps:$4 sm:$0xff]  }
  0x67   :  { %787 = vmatprep.subr.bf16.mxu1 %v2071_v6  ;;  %v2080_v11 = vld [vmem:[#allocation7 + $0x44] ss:$8 sps:$4 sm:$0xff]   ;;  %v2079_v12 = vld [vmem:[#allocation7 + $0x150] ss:$8 sps:$4 sm:$0xff]   ;;  %v2082_v14 = vld [vmem:[#allocation7 + $0x40] ss:$8 sps:$4 sm:$0xff]  }
  0x68   :  { %v2083_v13 = vld [vmem:[#allocation7 + $0x144] ss:$8 sps:$4 sm:$0xff]   ;;  %v2086_v15 = vld [vmem:[#allocation7 + $0x34] ss:$8 sps:$4 sm:$0xff]   ;;  %v2085_v16 = vld [vmem:[#allocation7 + $0x140] ss:$8 sps:$4 sm:$0xff]  }
  0x69   :  { %745 = vmatpush1.bf16.msra.mxu0 %v2070_v5  ;;  %v2089_v17 = vld [vmem:[#allocation7 + $0x134] ss:$8 sps:$4 sm:$0xff]   ;;  %v2088_v18 = vld [vmem:[#allocation7 + $0x30] ss:$8 sps:$4 sm:$0xff]   ;;  %v2092_v19 = vld [vmem:[#allocation7 + $0x24] ss:$8 sps:$4 sm:$0xff]  }
  0x6a   :  { %746 = vmatprep.subr.bf16.mxu0 %v2074_v8  ;;  %788 = vmatpush1.bf16.msra.mxu1 %v2073_v7  ;;  %v2091_v20 = vld [vmem:[#allocation7 + $0x130] ss:$8 sps:$4 sm:$0xff]   ;;  %v2095_v21 = vld [vmem:[#allocation7 + $0x124] ss:$8 sps:$4 sm:$0xff]   ;;  %v2094_v22 = vld [vmem:[#allocation7 + $0x20] ss:$8 sps:$4 sm:$0xff]  }
  0x6b   :  { %789 = vmatprep.subr.bf16.mxu1 %v2077_v10  ;;  %v2098_v23 = vld [vmem:[#allocation7 + $0x14] ss:$8 sps:$4 sm:$0xff]   ;;  %v2097_v24 = vld [vmem:[#allocation7 + $0x120] ss:$8 sps:$4 sm:$0xff]   ;;  %v2100_v26 = vld [vmem:[#allocation7 + $0x10] ss:$8 sps:$4 sm:$0xff]  }
  0x6c   :  { %v2101_v25 = vld [vmem:[#allocation7 + $0x114] ss:$8 sps:$4 sm:$0xff]   ;;  %v2104_v27 = vld [vmem:[#allocation7 + $0x4] ss:$8 sps:$4 sm:$0xff]   ;;  %v2103_v28 = vld [vmem:[#allocation7 + $0x110] ss:$8 sps:$4 sm:$0xff]  }
  0x6d   :  { %747 = vmatpush1.bf16.msra.mxu0 %v2076_v9  ;;  %v2107_v29 = vld [vmem:[#allocation7 + $0x104] ss:$8 sps:$4 sm:$0xff]   ;;  %v2106_v30 = vld [vmem:[#allocation7] ss:$8 sps:$4 sm:$0xff]   ;;  %v2110_v31 = vld [vmem:[#allocation7 + $0xf4] ss:$8 sps:$4 sm:$0xff]  }
  0x6e   :  { %748 = vmatprep.subr.bf16.mxu0 %v2080_v11  ;;  %790 = vmatpush1.bf16.msra.mxu1 %v2079_v12  ;;  %v2109_v32 = vld [vmem:[#allocation7 + $0x100] ss:$8 sps:$4 sm:$0xff]   ;;  %v2113_v33 = vld [vmem:[#allocation7 + $0x1f4] ss:$8 sps:$4 sm:$0xff]   ;;  %v2112_v34 = vld [vmem:[#allocation7 + $0xf0] ss:$8 sps:$4 sm:$0xff]  }
  0x6f   :  { %791 = vmatprep.subr.bf16.mxu1 %v2083_v13  ;;  %v2116_v35 = vld [vmem:[#allocation7 + $0xe4] ss:$8 sps:$4 sm:$0xff]   ;;  %v2115_v36 = vld [vmem:[#allocation7 + $0x1f0] ss:$8 sps:$4 sm:$0xff]   ;;  %v2118_v38 = vld [vmem:[#allocation7 + $0xe0] ss:$8 sps:$4 sm:$0xff]  }
  0x70   :  { %v2119_v37 = vld [vmem:[#allocation7 + $0x1e4] ss:$8 sps:$4 sm:$0xff]   ;;  %v2122_v39 = vld [vmem:[#allocation7 + $0xd4] ss:$8 sps:$4 sm:$0xff]   ;;  %v2121_v40 = vld [vmem:[#allocation7 + $0x1e0] ss:$8 sps:$4 sm:$0xff]  }
  0x71   :  { %749 = vmatpush1.bf16.msra.mxu0 %v2082_v14  ;;  %v2125_v41 = vld [vmem:[#allocation7 + $0x1d4] ss:$8 sps:$4 sm:$0xff]   ;;  %v2124_v42 = vld [vmem:[#allocation7 + $0xd0] ss:$8 sps:$4 sm:$0xff]   ;;  %v2128_v43 = vld [vmem:[#allocation7 + $0xc4] ss:$8 sps:$4 sm:$0xff]  }
  0x72   :  { %750 = vmatprep.subr.bf16.mxu0 %v2086_v15  ;;  %792 = vmatpush1.bf16.msra.mxu1 %v2085_v16  ;;  %v2127_v44 = vld [vmem:[#allocation7 + $0x1d0] ss:$8 sps:$4 sm:$0xff]   ;;  %v2131_v45 = vld [vmem:[#allocation7 + $0x1c4] ss:$8 sps:$4 sm:$0xff]   ;;  %v2130_v48 = vld [vmem:[#allocation7 + $0xc0] ss:$8 sps:$4 sm:$0xff]  }
  0x73   :  { %793 = vmatprep.subr.bf16.mxu1 %v2089_v17  ;;  %v137_v46 = vld [vmem:[#allocation2 + $0x8] sm:$0xff]  ;;  %v143_v47 = vld [vmem:[#allocation5 + $0x8] sm:$0xff]  ;;  %v136_v5 = vld [vmem:[#allocation2] sm:$0xff]  ;;  %vm2533_vm0 = vmmov 0   ;;  %s2534_s24 = smov [#allocation16]  }
  0x74   :  { %v149_v49 = vpack.c.bf16 %v143_v47, %v137_v46  ;;  %v2134_v50 = vld [vmem:[#allocation7 + $0xb4] ss:$8 sps:$4 sm:$0xff]   ;;  %v2133_v51 = vld [vmem:[#allocation7 + $0x1c0] ss:$8 sps:$4 sm:$0xff]   ;;  %v2136_v56 = vld [vmem:[#allocation7 + $0xb0] ss:$8 sps:$4 sm:$0xff]  }
  0x75   :  { %751 = vmatpush1.bf16.msra.mxu0 %v2088_v18  ;;  %v139_v52 = vld [vmem:[#allocation2 + $0x18] sm:$0xff]  ;;  %v145_v53 = vld [vmem:[#allocation5 + $0x18] sm:$0xff]  ;;  %v142_v7 = vld [vmem:[#allocation5] sm:$0xff] }
  0x76   :  { %752 = vmatprep.subr.bf16.mxu0 %v2092_v19  ;;  %794 = vmatpush1.bf16.msra.mxu1 %v2091_v20  ;;  %v2137_v54 = vld [vmem:[#allocation7 + $0x1b4] ss:$8 sps:$4 sm:$0xff]   ;;  %v151_v55 = vpack.c.bf16 %v145_v53, %v139_v52  ;;  %v2140_v57 = vld [vmem:[#allocation7 + $0xa4] ss:$8 sps:$4 sm:$0xff]   ;;  %v2139_v58 = vld [vmem:[#allocation7 + $0x1b0] ss:$8 sps:$4 sm:$0xff]   ;;  %v148_v11 = vpack.c.bf16 %v142_v7, %v136_v5 }
  0x77   :  { %795 = vmatprep.subr.bf16.mxu1 %v2095_v21  ;;  %774 = vmatprep.mubr.bf16.mxu0 %v149_v49  ;;  %v2143_v59 = vld [vmem:[#allocation7 + $0x1a4] ss:$8 sps:$4 sm:$0xff]   ;;  %v2142_v60 = vld [vmem:[#allocation7 + $0xa0] ss:$8 sps:$4 sm:$0xff]   ;;  %v2146_v61 = vld [vmem:[#allocation7 + $0x94] ss:$8 sps:$4 sm:$0xff]  }
  0x78   :  { %817 = vmatprep.mubr.bf16.mxu1 %v151_v55  ;;  %v2145_v62 = vld [vmem:[#allocation7 + $0x1a0] ss:$8 sps:$4 sm:$0xff]   ;;  %v2149_v63 = vld [vmem:[#allocation7 + $0x194] ss:$8 sps:$4 sm:$0xff]   ;;  %v2148_v0 = vld [vmem:[#allocation7 + $0x90] ss:$8 sps:$4 sm:$0xff]  }
  0x79   :  { %753 = vmatpush1.bf16.msra.mxu0 %v2094_v22  ;;  %v2151_v1 = vld [vmem:[#allocation7 + $0x190] ss:$8 sps:$4 sm:$0xff]   ;;  %v2152_v2 = vld [vmem:[#allocation7 + $0x84] ss:$8 sps:$4 sm:$0xff]   ;;  %v2154_v3 = vld [vmem:[#allocation7 + $0x80] ss:$8 sps:$4 sm:$0xff]  }
  0x7a   :  { %754 = vmatprep.subr.bf16.mxu0 %v2098_v23  ;;  %796 = vmatpush1.bf16.msra.mxu1 %v2097_v24  ;;  %v2155_v4 = vld [vmem:[#allocation7 + $0x184] ss:$8 sps:$4 sm:$0xff]   ;;  %v2157_v6 = vld [vmem:[#allocation7 + $0x180] ss:$8 sps:$4 sm:$0xff]   ;;  %v2160_v8 = vld [vmem:[#allocation7 + $0x274] ss:$8 sps:$4 sm:$0xff]  }
  0x7b   :  { %797 = vmatprep.subr.bf16.mxu1 %v2101_v25  ;;  %v138_v9 = vld [vmem:[#allocation2 + $0x10] sm:$0xff]  ;;  %v144_v10 = vld [vmem:[#allocation5 + $0x10] sm:$0xff]  ;;  %v141_v15 = vld [vmem:[#allocation2 + $0x28] sm:$0xff] }
  0x7c   :  { %v2158_v12 = vld [vmem:[#allocation7 + $0x270] ss:$8 sps:$4 sm:$0xff]   ;;  %v150_v13 = vpack.c.bf16 %v144_v10, %v138_v9  ;;  %v2163_v14 = vld [vmem:[#allocation7 + $0x264] ss:$8 sps:$4 sm:$0xff]   ;;  %v2161_v16 = vld [vmem:[#allocation7 + $0x260] ss:$8 sps:$4 sm:$0xff]  }
  0x7d   :  { %755 = vmatpush1.bf16.msra.mxu0 %v2100_v26  ;;  %v147_v17 = vld [vmem:[#allocation5 + $0x28] sm:$0xff]  ;;  %v2169_v21 = vld [vmem:[#allocation7 + $0x244] ss:$8 sps:$4 sm:$0xff]   ;;  %v2167_v22 = vld [vmem:[#allocation7 + $0x240] ss:$8 sps:$4 sm:$0xff]  }
  0x7e   :  { %756 = vmatprep.subr.bf16.mxu0 %v2104_v27  ;;  %798 = vmatpush1.bf16.msra.mxu1 %v2103_v28  ;;  %v2166_v18 = vld [vmem:[#allocation7 + $0x254] ss:$8 sps:$4 sm:$0xff]   ;;  %v153_v19 = vpack.c.bf16 %v147_v17, %v141_v15  ;;  %v2164_v20 = vld [vmem:[#allocation7 + $0x250] ss:$8 sps:$4 sm:$0xff]   ;;  %v2175_v25 = vld [vmem:[#allocation7 + $0x224] ss:$8 sps:$4 sm:$0xff]  }
  0x7f   :  { %799 = vmatprep.subr.bf16.mxu1 %v2107_v29  ;;  %v2172_v23 = vld [vmem:[#allocation7 + $0x234] ss:$8 sps:$4 sm:$0xff]   ;;  %v2170_v24 = vld [vmem:[#allocation7 + $0x230] ss:$8 sps:$4 sm:$0xff]   ;;  %v2173_v26 = vld [vmem:[#allocation7 + $0x220] ss:$8 sps:$4 sm:$0xff]  }
  0x80   :  { %v2178_v27 = vld [vmem:[#allocation7 + $0x214] ss:$8 sps:$4 sm:$0xff]   ;;  %v2176_v28 = vld [vmem:[#allocation7 + $0x210] ss:$8 sps:$4 sm:$0xff]   ;;  %v2181_v29 = vld [vmem:[#allocation7 + $0x204] ss:$8 sps:$4 sm:$0xff]  }
  0x81   :  { %757 = vmatpush1.bf16.msra.mxu0 %v2106_v30  ;;  %v2179_v30 = vld [vmem:[#allocation7 + $0x200] ss:$8 sps:$4 sm:$0xff]   ;;  %v2211_v52 = vld [vmem:[#allocation8 + $0x64] ss:$8 sps:$4 sm:$0xff]   ;;  %v2212_v55 = vld [vmem:[#allocation8 + $0x50] ss:$8 sps:$4 sm:$0xff]  }
  0x82   :  { %758 = vmatprep.subr.bf16.mxu0 %v2110_v31  ;;  %800 = vmatpush1.bf16.msra.mxu1 %v2109_v32  ;;  %v2184_v31 = vld [vmem:[#allocation7 + $0x2f4] ss:$8 sps:$4 sm:$0xff]   ;;  %v2182_v32 = vld [vmem:[#allocation7 + $0x2f0] ss:$8 sps:$4 sm:$0xff]   ;;  %v2203_v46 = vld [vmem:[#allocation7 + $0x280] ss:$8 sps:$4 sm:$0xff]  }
  0x83   :  { %801 = vmatprep.subr.bf16.mxu1 %v2113_v33  ;;  %v2187_v33 = vld [vmem:[#allocation7 + $0x2e4] ss:$8 sps:$4 sm:$0xff]   ;;  %v2209_v53 = vld [vmem:[#allocation8 + $0x60] ss:$8 sps:$4 sm:$0xff]   ;;  %v2236_v7 = vld [vmem:[#allocation8 + $0xd0] ss:$8 sps:$4 sm:$0xff]  }
  0x84   :  { %v140_v47 = vld [vmem:[#allocation2 + $0x20] sm:$0xff]  ;;  %v2244_v10 = vld [vmem:[#allocation8 + $0xb4] ss:$8 sps:$4 sm:$0xff]   ;;  %v2248_v15 = vld [vmem:[#allocation8 + $0x90] ss:$8 sps:$4 sm:$0xff]  }
  0x85   :  { %759 = vmatpush2.bf16.msra.mxu0 %v2112_v34  ;;  %v2185_v34 = vld [vmem:[#allocation7 + $0x2e0] ss:$8 sps:$4 sm:$0xff]  }
  0x86   :  { %760 = vmatprep.subr.bf16.mxu0 %v2116_v35  ;;  %802 = vmatpush2.bf16.msra.mxu1 %v2115_v36  ;;  %v2190_v35 = vld [vmem:[#allocation7 + $0x2d4] ss:$8 sps:$4 sm:$0xff]   ;;  %v2188_v36 = vld [vmem:[#allocation7 + $0x2d0] ss:$8 sps:$4 sm:$0xff]   ;;  %v2233_v5 = vld [vmem:[#allocation8 + $0xe0] ss:$8 sps:$4 sm:$0xff]  }
  0x87   :  { %803 = vmatprep.subr.bf16.mxu1 %v2119_v37  ;;  %v2193_v37 = vld [vmem:[#allocation7 + $0x2c4] ss:$8 sps:$4 sm:$0xff]   ;;  %v2239_v9 = vld [vmem:[#allocation8 + $0xc0] ss:$8 sps:$4 sm:$0xff]  }
  0x88   :  { %v2251_v17 = vld [vmem:[#allocation8 + $0x80] ss:$8 sps:$4 sm:$0xff]  }
  0x89   :  { %761 = vmatpush2.bf16.msra.mxu0 %v2118_v38  ;;  %v2191_v38 = vld [vmem:[#allocation7 + $0x2c0] ss:$8 sps:$4 sm:$0xff]  }
  0x8a   :  { %762 = vmatprep.subr.bf16.mxu0 %v2122_v39  ;;  %804 = vmatpush2.bf16.msra.mxu1 %v2121_v40  ;;  %v2196_v39 = vld [vmem:[#allocation7 + $0x2b4] ss:$8 sps:$4 sm:$0xff]   ;;  %v2194_v40 = vld [vmem:[#allocation7 + $0x2b0] ss:$8 sps:$4 sm:$0xff]  }
  0x8b   :  { %805 = vmatprep.subr.bf16.mxu1 %v2125_v41  ;;  %v2199_v41 = vld [vmem:[#allocation7 + $0x2a4] ss:$8 sps:$4 sm:$0xff]  }
  0x8d   :  { %763 = vmatpush2.bf16.msra.mxu0 %v2124_v42  ;;  %v2197_v42 = vld [vmem:[#allocation7 + $0x2a0] ss:$8 sps:$4 sm:$0xff]  }
  0x8e   :  { %764 = vmatprep.subr.bf16.mxu0 %v2128_v43  ;;  %806 = vmatpush2.bf16.msra.mxu1 %v2127_v44  ;;  %v2202_v43 = vld [vmem:[#allocation7 + $0x294] ss:$8 sps:$4 sm:$0xff]   ;;  %v2200_v44 = vld [vmem:[#allocation7 + $0x290] ss:$8 sps:$4 sm:$0xff]  }
  0x8f   :  { %807 = vmatprep.subr.bf16.mxu1 %v2131_v45  ;;  %v2205_v45 = vld [vmem:[#allocation7 + $0x284] ss:$8 sps:$4 sm:$0xff]  }
  0x91   :  { %765 = vmatpush2.bf16.msra.mxu0 %v2130_v48  ;;  %v146_v48 = vld [vmem:[#allocation5 + $0x20] sm:$0xff] }
  0x92   :  { %766 = vmatprep.subr.bf16.mxu0 %v2134_v50  ;;  %808 = vmatpush2.bf16.msra.mxu1 %v2133_v51  ;;  %v152_v49 = vpack.c.bf16 %v146_v48, %v140_v47  ;;  %v2206_v50 = vld [vmem:[#allocation8 + $0x70] ss:$8 sps:$4 sm:$0xff]   ;;  %v2208_v51 = vld [vmem:[#allocation8 + $0x74] ss:$8 sps:$4 sm:$0xff]  }
  0x93   :  { %809 = vmatprep.subr.bf16.mxu1 %v2137_v54  ;;  %v2214_v54 = vld [vmem:[#allocation8 + $0x54] ss:$8 sps:$4 sm:$0xff]  }
  0x95   :  { %767 = vmatpush2.bf16.msra.mxu0 %v2136_v56  ;;  %v2217_v56 = vld [vmem:[#allocation8 + $0x44] ss:$8 sps:$4 sm:$0xff]  }
  0x96   :  { %768 = vmatprep.subr.bf16.mxu0 %v2140_v57  ;;  %810 = vmatpush2.bf16.msra.mxu1 %v2139_v58  ;;  %v2215_v57 = vld [vmem:[#allocation8 + $0x40] ss:$8 sps:$4 sm:$0xff]   ;;  %v2220_v58 = vld [vmem:[#allocation8 + $0x34] ss:$8 sps:$4 sm:$0xff]  }
  0x97   :  { %811 = vmatprep.subr.bf16.mxu1 %v2143_v59  ;;  %v2218_v59 = vld [vmem:[#allocation8 + $0x30] ss:$8 sps:$4 sm:$0xff]  }
  0x99   :  { %769 = vmatpush2.bf16.msra.mxu0 %v2142_v60  ;;  %v2223_v60 = vld [vmem:[#allocation8 + $0x24] ss:$8 sps:$4 sm:$0xff]  }
  0x9a   :  { %770 = vmatprep.subr.bf16.mxu0 %v2146_v61  ;;  %812 = vmatpush2.bf16.msra.mxu1 %v2145_v62  ;;  %v2221_v61 = vld [vmem:[#allocation8 + $0x20] ss:$8 sps:$4 sm:$0xff]   ;;  %v2226_v62 = vld [vmem:[#allocation8 + $0x14] ss:$8 sps:$4 sm:$0xff]  }
  0x9b   :  { %813 = vmatprep.subr.bf16.mxu1 %v2149_v63  ;;  %v2224_v63 = vld [vmem:[#allocation8 + $0x10] ss:$8 sps:$4 sm:$0xff]  }
  0x9d   :  { %771 = vmatpush2.bf16.msra.mxu0 %v2148_v0  ;;  %v2229_v0 = vld [vmem:[#allocation8 + $0x4] ss:$8 sps:$4 sm:$0xff]  }
  0x9e   :  { %772 = vmatprep.subr.bf16.mxu0 %v2152_v2  ;;  %814 = vmatpush2.bf16.msra.mxu1 %v2151_v1  ;;  %v2227_v1 = vld [vmem:[#allocation8] ss:$8 sps:$4 sm:$0xff]   ;;  %v2232_v2 = vld [vmem:[#allocation8 + $0xf4] ss:$8 sps:$4 sm:$0xff]  }
  0x9f   :  { %815 = vmatprep.subr.bf16.mxu1 %v2155_v4  ;;  %v2235_v4 = vld [vmem:[#allocation8 + $0xe4] ss:$8 sps:$4 sm:$0xff]  }
  0xa1   :  { %773 = vmatpush2.bf16.msra.mxu0 %v2154_v3  ;;  %v2230_v3 = vld [vmem:[#allocation8 + $0xf0] ss:$8 sps:$4 sm:$0xff]  }
  0xa2   :  { %828 = vmatprep.subr.bf16.mxu0 %v2160_v8  ;;  %816 = vmatpush2.bf16.msra.mxu1 %v2157_v6  ;;  %v2238_v6 = vld [vmem:[#allocation8 + $0xd4] ss:$8 sps:$4 sm:$0xff]   ;;  %v2241_v8 = vld [vmem:[#allocation8 + $0xc4] ss:$8 sps:$4 sm:$0xff]  }
  0xa3   :  { %1088 = vmatprep.subr.bf16.mxu1 %v2208_v51 }
  0xa4   :  { %775 = vmatmul.mubr.bf16.vlgmr.msra.gmra.mxu0 %v148_v11  ;;  %v2242_v11 = vld [vmem:[#allocation8 + $0xb0] ss:$8 sps:$4 sm:$0xff]  }
  0xa5   :  { %829 = vmatpush1.bf16.msra.mxu0 %v2158_v12  ;;  %818 = vmatmul.mubr.bf16.vlgmr.msra.gmra.mxu1 %v150_v13  ;;  %v2247_v12 = vld [vmem:[#allocation8 + $0xa4] ss:$8 sps:$4 sm:$0xff]   ;;  %v2245_v13 = vld [vmem:[#allocation8 + $0xa0] ss:$8 sps:$4 sm:$0xff]  }
  0xa6   :  { %830 = vmatprep.subr.bf16.mxu0 %v2163_v14  ;;  %860 = vmatprep.mubr.bf16.mxu0 %v153_v19  ;;  %v2250_v14 = vld [vmem:[#allocation8 + $0x94] ss:$8 sps:$4 sm:$0xff]  }
  0xa7   :  { %1089 = vmatpush1.bf16.msra.mxu1 %v2206_v50 }
  0xa8   :  { %1090 = vmatprep.subr.bf16.mxu1 %v2211_v52 }
  0xa9   :  { %831 = vmatpush1.bf16.msra.mxu0 %v2161_v16  ;;  %v2253_v16 = vld [vmem:[#allocation8 + $0x84] ss:$8 sps:$4 sm:$0xff]  }
  0xaa   :  { %832 = vmatprep.subr.bf16.mxu0 %v2166_v18  ;;  %v252_v18 = vlaneseq }
  0xab   :  { %1091 = vmatpush1.bf16.msra.mxu1 %v2209_v53 }
  0xac   :  { %1092 = vmatprep.subr.bf16.mxu1 %v2214_v54 }
  0xad   :  { %833 = vmatpush1.bf16.msra.mxu0 %v2164_v20  ;;  %v253_v20 = vshrl.u32 %v252_v18, 7  ;;  %v2293_v18 = vld [vmem:[#allocation10 + $0xa0] ss:$8 sps:$4 sm:$0xff]  }
  0xae   :  { %834 = vmatprep.subr.bf16.mxu0 %v2169_v21 }
  0xaf   :  { %1093 = vmatpush1.bf16.msra.mxu1 %v2212_v55  ;;  %v2256_v55 = vld [vmem:[#allocation10 + $0x74] ss:$8 sps:$4 sm:$0xff]  }
  0xb0   :  { %1094 = vmatprep.subr.bf16.mxu1 %v2217_v56  ;;  %v2254_v56 = vld [vmem:[#allocation10 + $0x70] ss:$8 sps:$4 sm:$0xff]  }
  0xb1   :  { %835 = vmatpush1.bf16.msra.mxu0 %v2167_v22 }
  0xb2   :  { %836 = vmatprep.subr.bf16.mxu0 %v2172_v23  ;;  %v2619_v23 = vsub.s32 1, %v253_v20 }
  0xb3   :  { %1095 = vmatpush1.bf16.msra.mxu1 %v2215_v57  ;;  %v2259_v57 = vld [vmem:[#allocation10 + $0x64] ss:$8 sps:$4 sm:$0xff]  }
  0xb4   :  { %1096 = vmatprep.subr.bf16.mxu1 %v2220_v58  ;;  %v2257_v58 = vld [vmem:[#allocation10 + $0x60] ss:$8 sps:$4 sm:$0xff]  }
  0xb5   :  { %837 = vmatpush1.bf16.msra.mxu0 %v2170_v24  ;;  %v154_v24 = vld [vmem:[#allocation14] ss:$8 sm:$0x3] }
  0xb6   :  { %838 = vmatprep.subr.bf16.mxu0 %v2175_v25  ;;  %v2621_v25 = vsub.s32 0, %v253_v20  ;;  %v2298_v20 = vld [vmem:[#allocation10 + $0x94] ss:$8 sps:$4 sm:$0xff]  }
  0xb7   :  { %1097 = vmatpush1.bf16.msra.mxu1 %v2218_v59  ;;  %v2262_v59 = vld [vmem:[#allocation10 + $0x54] ss:$8 sps:$4 sm:$0xff]  }
  0xb8   :  { %1098 = vmatprep.subr.bf16.mxu1 %v2223_v60  ;;  %v2260_v60 = vld [vmem:[#allocation10 + $0x50] ss:$8 sps:$4 sm:$0xff]  }
  0xb9   :  { %839 = vmatpush1.bf16.msra.mxu0 %v2173_v26 }
  0xba   :  { %840 = vmatprep.subr.bf16.mxu0 %v2178_v27 }
  0xbb   :  { %1099 = vmatpush1.bf16.msra.mxu1 %v2221_v61  ;;  %v2265_v61 = vld [vmem:[#allocation10 + $0x44] ss:$8 sps:$4 sm:$0xff]  }
  0xbc   :  { %1100 = vmatprep.subr.bf16.mxu1 %v2226_v62  ;;  %v2263_v62 = vld [vmem:[#allocation10 + $0x40] ss:$8 sps:$4 sm:$0xff]  }
  0xbd   :  { %841 = vmatpush1.bf16.msra.mxu0 %v2176_v28  ;;  %v259_v28 = vrot.slane %v154_v24, %v2619_v23 }
  0xbe   :  { %842 = vmatprep.subr.bf16.mxu0 %v2181_v29  ;;  %v255_v29 = vrot.slane %v154_v24, %v2621_v25  ;;  %v2302_v24 = vld [vmem:[#allocation11 + $0x38] sm:$0xff]  }
  0xbf   :  { %1101 = vmatpush1.bf16.msra.mxu1 %v2224_v63  ;;  %v2268_v63 = vld [vmem:[#allocation10 + $0x34] ss:$8 sps:$4 sm:$0xff]  }
  0xc0   :  { %1102 = vmatprep.subr.bf16.mxu1 %v2229_v0  ;;  %v2266_v0 = vld [vmem:[#allocation10 + $0x30] ss:$8 sps:$4 sm:$0xff]  }
  0xc1   :  { %843 = vmatpush1.bf16.msra.mxu0 %v2179_v30 }
  0xc2   :  { %844 = vmatprep.subr.bf16.mxu0 %v2184_v31 }
  0xc3   :  { %1103 = vmatpush1.bf16.msra.mxu1 %v2227_v1  ;;  %v2271_v1 = vld [vmem:[#allocation10 + $0x24] ss:$8 sps:$4 sm:$0xff]  }
  0xc4   :  { %1104 = vmatprep.subr.bf16.mxu1 %v2232_v2  ;;  %v2269_v2 = vld [vmem:[#allocation10 + $0x20] ss:$8 sps:$4 sm:$0xff]  }
  0xc5   :  { %845 = vmatpush2.bf16.msra.mxu0 %v2182_v32 }
  0xc6   :  { %846 = vmatprep.subr.bf16.mxu0 %v2187_v33 }
  0xc7   :  { %1105 = vmatpush2.bf16.msra.mxu1 %v2230_v3  ;;  %v2274_v3 = vld [vmem:[#allocation10 + $0x14] ss:$8 sps:$4 sm:$0xff]  }
  0xc8   :  { %1106 = vmatprep.subr.bf16.mxu1 %v2235_v4  ;;  %v2272_v4 = vld [vmem:[#allocation10 + $0x10] ss:$8 sps:$4 sm:$0xff]  }
  0xc9   :  { %847 = vmatpush2.bf16.msra.mxu0 %v2185_v34 }
  0xca   :  { %848 = vmatprep.subr.bf16.mxu0 %v2190_v35 }
  0xcb   :  { %1107 = vmatpush2.bf16.msra.mxu1 %v2233_v5  ;;  %v2277_v5 = vld [vmem:[#allocation10 + $0x4] ss:$8 sps:$4 sm:$0xff]  }
  0xcc   :  { %1108 = vmatprep.subr.bf16.mxu1 %v2238_v6  ;;  %v2275_v6 = vld [vmem:[#allocation10] ss:$8 sps:$4 sm:$0xff]  }
  0xcd   :  { %849 = vmatpush2.bf16.msra.mxu0 %v2188_v36 }
  0xce   :  { %850 = vmatprep.subr.bf16.mxu0 %v2193_v37 }
  0xcf   :  { %1109 = vmatpush2.bf16.msra.mxu1 %v2236_v7  ;;  %v2280_v7 = vld [vmem:[#allocation10 + $0xf4] ss:$8 sps:$4 sm:$0xff]  }
  0xd0   :  { %1110 = vmatprep.subr.bf16.mxu1 %v2241_v8  ;;  %v2278_v8 = vld [vmem:[#allocation10 + $0xf0] ss:$8 sps:$4 sm:$0xff]  }
  0xd1   :  { %851 = vmatpush2.bf16.msra.mxu0 %v2191_v38 }
  0xd2   :  { %852 = vmatprep.subr.bf16.mxu0 %v2196_v39 }
  0xd3   :  { %1111 = vmatpush2.bf16.msra.mxu1 %v2239_v9  ;;  %v2283_v9 = vld [vmem:[#allocation10 + $0xe4] ss:$8 sps:$4 sm:$0xff]  }
  0xd4   :  { %1112 = vmatprep.subr.bf16.mxu1 %v2244_v10  ;;  %v2281_v10 = vld [vmem:[#allocation10 + $0xe0] ss:$8 sps:$4 sm:$0xff]  }
  0xd5   :  { %853 = vmatpush2.bf16.msra.mxu0 %v2194_v40 }
  0xd6   :  { %854 = vmatprep.subr.bf16.mxu0 %v2199_v41 }
  0xd7   :  { %1113 = vmatpush2.bf16.msra.mxu1 %v2242_v11  ;;  %v2286_v11 = vld [vmem:[#allocation10 + $0xd4] ss:$8 sps:$4 sm:$0xff]  }
  0xd8   :  { %1114 = vmatprep.subr.bf16.mxu1 %v2247_v12  ;;  %v2284_v12 = vld [vmem:[#allocation10 + $0xd0] ss:$8 sps:$4 sm:$0xff]  }
  0xd9   :  { %855 = vmatpush2.bf16.msra.mxu0 %v2197_v42 }
  0xda   :  { %856 = vmatprep.subr.bf16.mxu0 %v2202_v43 }
  0xdb   :  { %1115 = vmatpush2.bf16.msra.mxu1 %v2245_v13  ;;  %v2289_v13 = vld [vmem:[#allocation10 + $0xc4] ss:$8 sps:$4 sm:$0xff]  }
  0xdc   :  { %1116 = vmatprep.subr.bf16.mxu1 %v2250_v14  ;;  %v2287_v14 = vld [vmem:[#allocation10 + $0xc0] ss:$8 sps:$4 sm:$0xff]  }
  0xdd   :  { %857 = vmatpush2.bf16.msra.mxu0 %v2200_v44 }
  0xde   :  { %858 = vmatprep.subr.bf16.mxu0 %v2205_v45 }
  0xdf   :  { %1117 = vmatpush2.bf16.msra.mxu1 %v2248_v15  ;;  %v2292_v15 = vld [vmem:[#allocation10 + $0xb4] ss:$8 sps:$4 sm:$0xff]  }
  0xe0   :  { %1118 = vmatprep.subr.bf16.mxu1 %v2253_v16  ;;  %v2290_v16 = vld [vmem:[#allocation10 + $0xb0] ss:$8 sps:$4 sm:$0xff]  }
  0xe1   :  { %859 = vmatpush2.bf16.msra.mxu0 %v2203_v46 }
  0xe2   :  { %1447 = vmatprep.subr.bf16.mxu0 %v2256_v55 }
  0xe3   :  { %1119 = vmatpush2.bf16.msra.mxu1 %v2251_v17  ;;  %v2295_v17 = vld [vmem:[#allocation10 + $0xa4] ss:$8 sps:$4 sm:$0xff]  }
  0xe4   :  { %861 = vmatmul.mubr.bf16.vlgmr.msra.gmra.mxu0 %v152_v49 }
  0xe5   :  { %1448 = vmatpush1.bf16.msra.mxu0 %v2254_v56 }
  0xe6   :  { %1449 = vmatprep.subr.bf16.mxu0 %v2259_v57 }
  0xe9   :  { %1450 = vmatpush1.bf16.msra.mxu0 %v2257_v58 }
  0xea   :  { %1451 = vmatprep.subr.bf16.mxu0 %v2262_v59 }
  0xed   :  { %1452 = vmatpush1.bf16.msra.mxu0 %v2260_v60 }
  0xee   :  { %1453 = vmatprep.subr.bf16.mxu0 %v2265_v61 }
  0xf1   :  { %1454 = vmatpush1.bf16.msra.mxu0 %v2263_v62 }
  0xf2   :  { %1455 = vmatprep.subr.bf16.mxu0 %v2268_v63 }
  0xf5   :  { %1456 = vmatpush1.bf16.msra.mxu0 %v2266_v0 }
  0xf6   :  { %1457 = vmatprep.subr.bf16.mxu0 %v2271_v1 }
  0xf9   :  { %1458 = vmatpush1.bf16.msra.mxu0 %v2269_v2 }
  0xfa   :  { %1459 = vmatprep.subr.bf16.mxu0 %v2274_v3 }
  0xfd   :  { %1460 = vmatpush1.bf16.msra.mxu0 %v2272_v4 }
  0xfe   :  { %1461 = vmatprep.subr.bf16.mxu0 %v2277_v5 }
 0x101   :  { %1462 = vmatpush1.bf16.msra.mxu0 %v2275_v6 }
 0x102   :  { %1463 = vmatprep.subr.bf16.mxu0 %v2280_v7 }
 0x105   :  { %1464 = vmatpush2.bf16.msra.mxu0 %v2278_v8 }
 0x106   :  { %1465 = vmatprep.subr.bf16.mxu0 %v2283_v9 }
 0x109   :  { %1466 = vmatpush2.bf16.msra.mxu0 %v2281_v10 }
 0x10a   :  { %1467 = vmatprep.subr.bf16.mxu0 %v2286_v11 }
 0x10d   :  { %1468 = vmatpush2.bf16.msra.mxu0 %v2284_v12 }
 0x10e   :  { %1469 = vmatprep.subr.bf16.mxu0 %v2289_v13 }
 0x111   :  { %1470 = vmatpush2.bf16.msra.mxu0 %v2287_v14 }
 0x112   :  { %1471 = vmatprep.subr.bf16.mxu0 %v2292_v15 }
 0x115   :  { %1472 = vmatpush2.bf16.msra.mxu0 %v2290_v16 }
 0x116   :  { %1473 = vmatprep.subr.bf16.mxu0 %v2295_v17 }
 0x119   :  { %1474 = vmatpush2.bf16.msra.mxu0 %v2293_v18 }
 0x11a   :  { %1475 = vmatprep.subr.bf16.mxu0 %v2298_v20 }
 0x164   :  { %v776_v19 = vpop.f32.mrf.mxu0 }
 0x165   :  { %v819_v22 = vpop.f32.mrf.mxu1  ;;  %v777_v34 = vadd.f32 %v776_v19, %v255_v29  ;;  %v2296_v19 = vld [vmem:[#allocation10 + $0x90] ss:$8 sps:$4 sm:$0xff]  }
 0x166   :  { %v778_v21 = vpop.f32.mrf.mxu0  ;;  %1476 = vmatpush2.bf16.msra.mxu0 %v2296_v19 }
 0x167   :  { %v821_v27 = vpop.f32.mrf.mxu1  ;;  %v779_v32 = vadd.f32 %v778_v21, %v259_v28  ;;  %v820_v41 = vadd.f32 %v819_v22, %v777_v34  ;;  %v2301_v21 = vld [vmem:[#allocation10 + $0x84] ss:$8 sps:$4 sm:$0xff]   ;;  %v2299_v22 = vld [vmem:[#allocation10 + $0x80] ss:$8 sps:$4 sm:$0xff]  }
 0x168   :  { %v780_v26 = vpop.f32.mrf.mxu0  ;;  %1477 = vmatprep.subr.bf16.mxu0 %v2301_v21 }
 0x169   :  { %v823_v31 = vpop.f32.mrf.mxu1  ;;  %v781_v33 = vadd.f32 %v780_v26, %v255_v29  ;;  %v822_v39 = vadd.f32 %v821_v27, %v779_v32  ;;  %v2532_v26 = vmov 0.0   ;;  %v2303_v27 = vld [vmem:[#allocation11 + $0x30] sm:$0xff]   ;;  %v2305_v29 = vld [vmem:[#allocation11 + $0x20] sm:$0xff]  }
 0x16a   :  { %v782_v30 = vpop.f32.mrf.mxu0  ;;  %1478 = vmatpush2.bf16.msra.mxu0 %v2299_v22  ;;  %2003 = vmatprep.subr.bf16.mxu1 %v2532_v26  ;;  %v876_v32 = vld [vmem:[#allocation14 + $0x1] ss:$8 sm:$0x3] }
 0x16b   :  { %v783_v36 = vadd.f32 %v782_v30, %v259_v28  ;;  %v825_v37 = vpop.f32.mrf.mxu1  ;;  %v824_v40 = vadd.f32 %v823_v31, %v781_v33  ;;  %v2304_v28 = vld [vmem:[#allocation11 + $0x28] sm:$0xff]   ;;  %v2306_v30 = vld [vmem:[#allocation11 + $0x18] sm:$0xff]   ;;  %v2307_v31 = vld [vmem:[#allocation11 + $0x10] sm:$0xff]   ;;  %v921_v33 = vrot.slane %v876_v32, %v2621_v25  ;;  %v925_v34 = vrot.slane %v876_v32, %v2619_v23 }
 0x16d   :  { %v826_v43 = vadd.f32 %v825_v37, %v783_v36 }
 0x1a4   :  { %v862_v35 = vpop.f32.mrf.mxu0 }
 0x1a5   :  { %v863_v46 = vadd.f32 %v862_v35, %v820_v41 }
 0x1a6   :  { %v864_v38 = vpop.f32.mrf.mxu0 }
 0x1a7   :  { %v865_v44 = vadd.f32 %v864_v38, %v822_v39  ;;  %v871_v52 = vmax.f32 %v863_v46, 0.0 }
 0x1a8   :  { %v866_v42 = vpop.f32.mrf.mxu0 }
 0x1a9   :  { %v867_v45 = vadd.f32 %v866_v42, %v824_v40  ;;  %v872_v50 = vmax.f32 %v865_v44, 0.0 }
 0x1aa   :  { %v868_v47 = vpop.f32.mrf.mxu0 }
 0x1ab   :  { %v869_v48 = vadd.f32 %v868_v47, %v826_v43  ;;  %v873_v49 = vmax.f32 %v867_v45, 0.0 }
 0x1ad   :  { %v874_v51 = vmax.f32 %v869_v48, 0.0  ;;  %v883_v54 = vpack.c.bf16 %v873_v49, %v871_v52 }
 0x1af   :  { %v884_v53 = vpack.c.bf16 %v874_v51, %v872_v50 }
 0x1b1   :  { %1120 = vmatprep.mubr.bf16.mxu1 %v884_v53 }
 0x1b2   :  { %1121 = vmatmul.mubr.bf16.vlgmr.msra.gmra.mxu1 %v883_v54 }
 0x1b3   :  { %2004 = vmatpush3.bf16.msra.mxu1 %v2302_v24  ;;  %2019 = vmatprep.mubr.msk.bf16.mxu1 %vm2533_vm0, %v2532_v26 }
 0x1b4   :  { %2005 = vmatprep.subr.bf16.mxu1 %v2532_v26 }
 0x1b7   :  { %2006 = vmatpush3.bf16.msra.mxu1 %v2303_v27 }
 0x1b8   :  { %2007 = vmatprep.subr.bf16.mxu1 %v2532_v26 }
 0x1bb   :  { %2008 = vmatpush3.bf16.msra.mxu1 %v2304_v28 }
 0x1bc   :  { %2009 = vmatprep.subr.bf16.mxu1 %v2532_v26 }
 0x1bf   :  { %2010 = vmatpush3.bf16.msra.mxu1 %v2305_v29 }
 0x1c0   :  { %2011 = vmatprep.subr.bf16.mxu1 %v2532_v26 }
 0x1c3   :  { %2012 = vmatpush3.bf16.msra.mxu1 %v2306_v30 }
 0x1c4   :  { %2013 = vmatprep.subr.bf16.mxu1 %v2532_v26 }
 0x1c7   :  { %2014 = vmatpush3.bf16.msra.mxu1 %v2307_v31 }
 0x1c8   :  { %2015 = vmatprep.subr.bf16.mxu1 %v2532_v26 }
 0x272   :  { %v1122_v35 = vpop.f32.mrf.mxu1 }
 0x273   :  { %v1123_v36 = vadd.f32 %v1122_v35, %v921_v33 }
 0x274   :  { %v1124_v37 = vpop.f32.mrf.mxu1 }
 0x275   :  { %v1131_v38 = vrot.slane %v1123_v36, 4  ;;  %v1125_v39 = vadd.f32 %v1124_v37, %v925_v34 }
 0x276   :  { %v1126_v40 = vpop.f32.mrf.mxu1 }
 0x277   :  { %v1132_v41 = vadd.f32 %v1131_v38, %v1123_v36  ;;  %v1137_v42 = vrot.slane %v1125_v39, 4  ;;  %v1127_v43 = vadd.f32 %v1126_v40, %v921_v33 }
 0x278   :  { %v1128_v44 = vpop.f32.mrf.mxu1 }
 0x279   :  { %v1133_v45 = vrot.slane %v1132_v41, 2  ;;  %v1138_v46 = vadd.f32 %v1137_v42, %v1125_v39  ;;  %v1143_v47 = vrot.slane %v1127_v43, 4  ;;  %v1129_v48 = vadd.f32 %v1128_v44, %v925_v34 }
 0x27b   :  { %v1134_v49 = vadd.f32 %v1133_v45, %v1132_v41  ;;  %v1139_v50 = vrot.slane %v1138_v46, 2  ;;  %v1144_v51 = vadd.f32 %v1143_v47, %v1127_v43  ;;  %v1149_v52 = vrot.slane %v1129_v48, 4 }
 0x27d   :  { %v1135_v53 = vrot.slane %v1134_v49, 1  ;;  %v1140_v54 = vadd.f32 %v1139_v50, %v1138_v46  ;;  %v1145_v55 = vrot.slane %v1144_v51, 2  ;;  %v1150_v56 = vadd.f32 %v1149_v52, %v1129_v48  ;;  %v878_v50 = vld [vmem:[#allocation14 + $0x2] ss:$8 sm:$0x3] }
 0x27e   :  { %v1216_v52 = vrot.slane %v878_v50, %v2619_v23 }
 0x27f   :  { %v1136_v57 = vadd.f32 %v1135_v53, %v1134_v49  ;;  %v1141_v58 = vrot.slane %v1140_v54, 1  ;;  %v1146_v59 = vadd.f32 %v1145_v55, %v1144_v51  ;;  %v1151_v60 = vrot.slane %v1150_v56, 2 }
 0x280   :  { %v1212_v55 = vrot.slane %v878_v50, %v2621_v25 }
 0x281   :  { %v1156_v61 = vmul.f32 0.125, %v1136_v57  ;;  %v1142_v62 = vadd.f32 %v1141_v58, %v1140_v54  ;;  %v1147_v63 = vrot.slane %v1146_v59, 1  ;;  %v1152_v0 = vadd.f32 %v1151_v60, %v1150_v56  ;;  %v880_v57 = vld [vmem:[#allocation14 + $0x3] ss:$8 sm:$0x3] }
 0x283   :  { %v1160_v1 = vsub.f32 %v1123_v36, %v1156_v61  ;;  %v1157_v2 = vmul.f32 0.125, %v1142_v62  ;;  %v1148_v3 = vadd.f32 %v1147_v63, %v1146_v59  ;;  %v1153_v4 = vrot.slane %v1152_v0, 1 }
 0x284   :  { %v1231_v61 = vrot.slane %v880_v57, %v2619_v23 }
 0x285   :  { %v1164_v5 = vmul.f32 %v1160_v1, %v1160_v1  ;;  %v1161_v6 = vsub.f32 %v1125_v39, %v1157_v2  ;;  %v1158_v7 = vmul.f32 0.125, %v1148_v3  ;;  %v1154_v8 = vadd.f32 %v1153_v4, %v1152_v0 }
 0x286   :  { %v1227_v0 = vrot.slane %v880_v57, %v2621_v25 }
 0x287   :  { %v1168_v9 = vrot.slane %v1164_v5, 4  ;;  %v1165_v10 = vmul.f32 %v1161_v6, %v1161_v6  ;;  %v1162_v11 = vsub.f32 %v1127_v43, %v1158_v7  ;;  %v1159_v12 = vmul.f32 0.125, %v1154_v8 }
 0x289   :  { %v1169_v13 = vadd.f32 %v1168_v9, %v1164_v5  ;;  %v1174_v14 = vrot.slane %v1165_v10, 4  ;;  %v1166_v15 = vmul.f32 %v1162_v11, %v1162_v11  ;;  %v1163_v16 = vsub.f32 %v1129_v48, %v1159_v12 }
 0x28b   :  { %v1170_v17 = vrot.slane %v1169_v13, 2  ;;  %v1175_v18 = vadd.f32 %v1174_v14, %v1165_v10  ;;  %v1180_v19 = vrot.slane %v1166_v15, 4  ;;  %v1167_v20 = vmul.f32 %v1163_v16, %v1163_v16  ;;  %v2308_v14 = vld [vmem:[#allocation11 + $0x8] sm:$0xff]  }
 0x28c   :  { %2016 = vmatpush3.bf16.msra.mxu1 %v2308_v14 }
 0x28d   :  { %v1171_v21 = vadd.f32 %v1170_v17, %v1169_v13  ;;  %v1176_v22 = vrot.slane %v1175_v18, 2  ;;  %v1181_v24 = vadd.f32 %v1180_v19, %v1166_v15  ;;  %v1186_v27 = vrot.slane %v1167_v20, 4  ;;  %2017 = vmatprep.subr.bf16.mxu1 %v2532_v26  ;;  %v2309_v15 = vld [vmem:[#allocation11] sm:$0xff]  }
 0x28f   :  { %v1172_v28 = vrot.slane %v1171_v21, 1  ;;  %v1177_v29 = vadd.f32 %v1176_v22, %v1175_v18  ;;  %v1182_v30 = vrot.slane %v1181_v24, 2  ;;  %v1187_v31 = vadd.f32 %v1186_v27, %v1167_v20 }
 0x290   :  { %2018 = vmatpush3.bf16.msra.mxu1 %v2309_v15 }
 0x291   :  { %v1173_v32 = vadd.f32 %v1172_v28, %v1171_v21  ;;  %v1178_v33 = vrot.slane %v1177_v29, 1  ;;  %v1183_v34 = vadd.f32 %v1182_v30, %v1181_v24  ;;  %v1188_v35 = vrot.slane %v1187_v31, 2  ;;  %2023 = vmatprep.subr.bf16.mxu1 %v2532_v26 }
 0x293   :  { %v1192_v36 = vmul.f32 0.125, %v1173_v32  ;;  %v1179_v37 = vadd.f32 %v1178_v33, %v1177_v29  ;;  %v1184_v38 = vrot.slane %v1183_v34, 1  ;;  %v1189_v39 = vadd.f32 %v1188_v35, %v1187_v31  ;;  %v2311_v32 = vld [vmem:[#allocation13 + $0x30] sm:$0xff]   ;;  %v2312_v33 = vld [vmem:[#allocation13 + $0x28] sm:$0xff]   ;;  %v2314_v35 = vld [vmem:[#allocation13 + $0x18] sm:$0xff]  }
 0x295   :  { %v1196_v40 = vadd.f32 1e-05, %v1192_v36  ;;  %v1193_v41 = vmul.f32 0.125, %v1179_v37  ;;  %v1185_v42 = vadd.f32 %v1184_v38, %v1183_v34  ;;  %v1190_v43 = vrot.slane %v1189_v39, 1  ;;  %v2313_v34 = vld [vmem:[#allocation13 + $0x20] sm:$0xff]   ;;  %v2315_v36 = vld [vmem:[#allocation13 + $0x10] sm:$0xff]  }
 0x296   :  { %v2316_v37 = vld [vmem:[#allocation13 + $0x8] sm:$0xff]   ;;  %v2317_v38 = vld [vmem:[#allocation13] sm:$0xff]  }
 0x297   :  { %2318 = vrsqrt.f32 %v1196_v40  ;;  %v1197_v44 = vadd.f32 1e-05, %v1193_v41  ;;  %v1194_v45 = vmul.f32 0.125, %v1185_v42  ;;  %v1191_v46 = vadd.f32 %v1190_v43, %v1189_v39  ;;  %v1490_v39 = vld [vmem:[#allocation14 + $0x5] ss:$0 sm:$0xff] }
 0x299   :  { %2320 = vrsqrt.f32 %v1197_v44  ;;  %v1198_v47 = vadd.f32 1e-05, %v1194_v45  ;;  %v1195_v48 = vmul.f32 0.125, %v1191_v46 }
 0x29b   :  { %2322 = vrsqrt.f32 %v1198_v47  ;;  %v1199_v49 = vadd.f32 1e-05, %v1195_v48 }
 0x29d   :  { %2324 = vrsqrt.f32 %v1199_v49 }
 0x2a4   :  { %v2319_v51 = vpop.eup %2318 }
 0x2a5   :  { %v1204_v54 = vmul.f32 %v2319_v51, %v1160_v1 }
 0x2a6   :  { %v2321_v53 = vpop.eup %2320 }
 0x2a7   :  { %v1205_v56 = vmul.f32 %v2321_v53, %v1161_v6  ;;  %v1219_v63 = vmul.f32 %v1212_v55, %v1204_v54 }
 0x2a8   :  { %v2323_v58 = vpop.eup %2322 }
 0x2a9   :  { %v1206_v59 = vmul.f32 %v2323_v58, %v1162_v11  ;;  %v1220_v60 = vmul.f32 %v1216_v52, %v1205_v56  ;;  %v1234_v8 = vadd.f32 %v1227_v0, %v1219_v63 }
 0x2aa   :  { %v2325_v62 = vpop.eup %2324 }
 0x2ab   :  { %v1221_v2 = vmul.f32 %v1212_v55, %v1206_v59  ;;  %v1207_v3 = vmul.f32 %v2325_v62, %v1163_v16  ;;  %v1235_v5 = vadd.f32 %v1231_v61, %v1220_v60  ;;  %v1238_v12 = vmax.f32 %v1234_v8, 0.0  ;;  %v882_v16 = vld [vmem:[#allocation14 + $0x4] ss:$8 sm:$0x3] }
 0x2ac   :  { %v1280_v18 = vrot.slane %v882_v16, %v2621_v25  ;;  %v1284_v22 = vrot.slane %v882_v16, %v2619_v23  ;;  %v2310_v23 = vld [vmem:[#allocation13 + $0x38] sm:$0xff]   ;;  %v1491_v16 = vld [vmem:[#allocation14 + $0x6] ss:$0 sm:$0xff] }
 0x2ad   :  { %v1222_v4 = vmul.f32 %v1216_v52, %v1207_v3  ;;  %v1236_v7 = vadd.f32 %v1227_v0, %v1221_v2  ;;  %v1239_v10 = vmax.f32 %v1235_v5, 0.0 }
 0x2af   :  { %v1237_v1 = vadd.f32 %v1231_v61, %v1222_v4  ;;  %v1240_v9 = vmax.f32 %v1236_v7, 0.0 }
 0x2b1   :  { %v1241_v6 = vmax.f32 %v1237_v1, 0.0  ;;  %v1242_v11 = vpack.c.bf16 %v1240_v9, %v1238_v12 }
 0x2b3   :  { %v1243_v13 = vpack.c.bf16 %v1241_v6, %v1239_v10 }
 0x2b5   :  { %1479 = vmatprep.mubr.bf16.mxu0 %v1243_v13 }
 0x2b6   :  { %1480 = vmatmul.mubr.bf16.vlgmr.msra.gmra.mxu0 %v1242_v11 }
 0x376   :  { %v1481_v17 = vpop.f32.mrf.mxu0 }
 0x377   :  { %v1482_v21 = vadd.f32 %v1481_v17, %v1280_v18 }
 0x378   :  { %v1483_v19 = vpop.f32.mrf.mxu0 }
 0x379   :  { %v2646_v30 = vadd.f32 %v1483_v19, %v1284_v22 }
 0x37a   :  { %v1485_v20 = vpop.f32.mrf.mxu0 }
 0x37b   :  { %v1486_v24 = vadd.f32 %v1485_v20, %v1280_v18  ;;  %v1763_v25 = vmul.f32 %v2646_v30, %v2646_v30  ;;  %v1492_v20 = vld [vmem:[#allocation14 + $0x7] ss:$0 sm:$0xff] }
 0x37c   :  { %v1487_v27 = vpop.f32.mrf.mxu0 }
 0x37d   :  { %v1494_v28 = vpack.c.bf16 %v1486_v24, %v1482_v21  ;;  %v2644_v29 = vadd.f32 %v1487_v27, %v1284_v22 }
 0x37f   :  { %2020 = vmatmul.mubr.bf16.vlgmr.msra.gmra.mxu1 %v1494_v28  ;;  %v1762_v31 = vmul.f32 %v2644_v29, %v2644_v29 }
 0x380   :  { %2039 = vmatprep.mubr.msk.bf16.mxu1 %vm2533_vm0, %v2532_v26  ;;  %2024 = vmatpush3.bf16.msra.mxu1 %v2310_v23  ;;  %v1493_v23 = vld [vmem:[#allocation14 + $0x10] ss:$0 sm:$0xff] }
 0x381   :  { %1764 = vadd.xlane.f32.xlu1 %v1762_v31  ;;  %2025 = vmatprep.subr.bf16.mxu1 %v2532_v26 }
 0x384   :  { %2026 = vmatpush3.bf16.msra.mxu1 %v2311_v32 }
 0x385   :  { %1766 = vadd.xlane.f32.xlu1 %v1763_v25  ;;  %2027 = vmatprep.subr.bf16.mxu1 %v2532_v26 }
 0x388   :  { %2028 = vmatpush3.bf16.msra.mxu1 %v2312_v33 }
 0x389   :  { %2029 = vmatprep.subr.bf16.mxu1 %v2532_v26 }
 0x38c   :  { %2030 = vmatpush3.bf16.msra.mxu1 %v2313_v34 }
 0x38d   :  { %2031 = vmatprep.subr.bf16.mxu1 %v2532_v26 }
 0x390   :  { %2032 = vmatpush3.bf16.msra.mxu1 %v2314_v35 }
 0x391   :  { %2033 = vmatprep.subr.bf16.mxu1 %v2532_v26 }
 0x394   :  { %2034 = vmatpush3.bf16.msra.mxu1 %v2315_v36 }
 0x395   :  { %2035 = vmatprep.subr.bf16.mxu1 %v2532_v26 }
 0x398   :  { %2036 = vmatpush3.bf16.msra.mxu1 %v2316_v37 }
 0x399   :  { %2037 = vmatprep.subr.bf16.mxu1 %v2532_v26 }
 0x39c   :  { %2038 = vmatpush3.bf16.msra.mxu1 %v2317_v38 }
 0x43f   :  { %v1593_v40 = vpop.f32.mrf.mxu1 }
 0x440   :  { %v1594_v41 = vadd.f32 %v1593_v40, %v1490_v39  ;;  %v1765_v40 = vpop.xlane.xlu1 %1764 }
 0x441   :  { %v2021_v42 = vpop.f32.mrf.mxu1 }
 0x442   :  { %v1600_v43 = vrot.slane %v1594_v41, 4  ;;  %v1768_v42 = vmax.f32 %v1765_v40, 1e-24 }
 0x443   :  { %v1596_v44 = vpop.f32.mrf.mxu1 }
 0x444   :  { %v1601_v45 = vadd.f32 %v1600_v43, %v1594_v41  ;;  %v1597_v46 = vadd.f32 %v1596_v44, %v1490_v39 }
 0x445   :  { %v2022_v47 = vpop.f32.mrf.mxu1 }
 0x446   :  { %v1602_v48 = vrot.slane %v1601_v45, 2  ;;  %v1606_v49 = vrot.slane %v1597_v46, 4 }
 0x448   :  { %v1603_v50 = vadd.f32 %v1602_v48, %v1601_v45  ;;  %v1607_v51 = vadd.f32 %v1606_v49, %v1597_v46 }
 0x44a   :  { %v1604_v52 = vrot.slane %v1603_v50, 1  ;;  %v1608_v53 = vrot.slane %v1607_v51, 2 }
 0x44c   :  { %v1605_v54 = vadd.f32 %v1604_v52, %v1603_v50  ;;  %v1609_v55 = vadd.f32 %v1608_v53, %v1607_v51 }
 0x44e   :  { %v1612_v56 = vmul.f32 0.125, %v1605_v54  ;;  %v1610_v26 = vrot.slane %v1609_v55, 1 }
 0x450   :  { %v1614_v57 = vsub.f32 %v1594_v41, %v1612_v56  ;;  %v1611_v58 = vadd.f32 %v1610_v26, %v1609_v55  ;;  %v1767_v41 = vpop.xlane.xlu1 %1766 }
 0x451   :  { %v1769_v44 = vmax.f32 %v1767_v41, 1e-24 }
 0x452   :  { %v1616_v59 = vmul.f32 %v1614_v57, %v1614_v57  ;;  %v1613_v60 = vmul.f32 0.125, %v1611_v58 }
 0x454   :  { %v1618_v61 = vrot.slane %v1616_v59, 4  ;;  %v1615_v62 = vsub.f32 %v1597_v46, %v1613_v60 }
 0x456   :  { %v1619_v63 = vadd.f32 %v1618_v61, %v1616_v59  ;;  %v1617_v0 = vmul.f32 %v1615_v62, %v1615_v62 }
 0x458   :  { %v1620_v2 = vrot.slane %v1619_v63, 2  ;;  %v1624_v3 = vrot.slane %v1617_v0, 4 }
 0x45a   :  { %v1621_v4 = vadd.f32 %v1620_v2, %v1619_v63  ;;  %v1625_v5 = vadd.f32 %v1624_v3, %v1617_v0 }
 0x45c   :  { %v1622_v7 = vrot.slane %v1621_v4, 1  ;;  %v1626_v8 = vrot.slane %v1625_v5, 2 }
 0x45e   :  { %v1623_v1 = vadd.f32 %v1622_v7, %v1621_v4  ;;  %v1627_v9 = vadd.f32 %v1626_v8, %v1625_v5 }
 0x460   :  { %v1630_v10 = vmul.f32 0.125, %v1623_v1  ;;  %v1628_v6 = vrot.slane %v1627_v9, 1 }
 0x462   :  { %v1632_v12 = vadd.f32 1e-05, %v1630_v10  ;;  %v1629_v13 = vadd.f32 %v1628_v6, %v1627_v9 }
 0x464   :  { %2326 = vrsqrt.f32 %v1632_v12  ;;  %v1631_v11 = vmul.f32 0.125, %v1629_v13 }
 0x466   :  { %v1633_v14 = vadd.f32 1e-05, %v1631_v11 }
 0x468   :  { %2328 = vrsqrt.f32 %v1633_v14 }
 0x471   :  { %v2327_v15 = vpop.eup %2326 }
 0x472   :  { %v1636_v17 = vmul.f32 %v2327_v15, %v1614_v57 }
 0x474   :  { %v1638_v18 = vmul.f32 %v1636_v17, %v1491_v16 }
 0x475   :  { %v2329_v19 = vpop.eup %2328 }
 0x476   :  { %v1637_v21 = vmul.f32 %v2329_v19, %v1615_v62  ;;  %v1640_v24 = vadd.f32 %v1638_v18, %v1492_v20 }
 0x478   :  { %v1639_v22 = vmul.f32 %v1637_v21, %v1491_v16  ;;  %v1642_v28 = vmax.f32 %v1640_v24, 0.0 }
 0x47a   :  { %v1641_v27 = vadd.f32 %v1639_v22, %v1492_v20 }
 0x47c   :  { %v1643_v31 = vmax.f32 %v1641_v27, 0.0 }
 0x47e   :  { %v1644_v25 = vpack.c.bf16 %v1643_v31, %v1642_v28 }
 0x480   :  { %2040 = vmatmul.mubr.bf16.vlgmr.msra.gmra.mxu1 %v1644_v25 }
 0x540   :  { %v1743_v32 = vpop.f32.mrf.mxu1 }
 0x541   :  { %v1744_v33 = vadd.f32 %v1743_v32, %v1493_v23 }
 0x542   :  { %v2041_v34 = vpop.f32.mrf.mxu1 }
 0x543   :  { %v1750_v35 = vmul.f32 %v1744_v33, %v1744_v33 }
 0x544   :  { %v1746_v36 = vpop.f32.mrf.mxu1 }
 0x545   :  { %v1747_v37 = vadd.f32 %v1746_v36, %v1493_v23  ;;  %1752 = vadd.xlane.f32.xlu0 %v1750_v35 }
 0x546   :  { %v2042_v38 = vpop.f32.mrf.mxu1 }
 0x547   :  { %v1751_v39 = vmul.f32 %v1747_v37, %v1747_v37 }
 0x549   :  { %1754 = vadd.xlane.f32.xlu0 %v1751_v39 }
 0x5ce   :  { %v1753_v43 = vpop.xlane.xlu0 %1752 }
 0x5cf   :  { %v1756_v45 = vmax.f32 %v1753_v43, 1e-24 }
 0x5d1   :  { %2330 = vrsqrt.f32 %v1756_v45 }
 0x5d2   :  { %2332 = vrsqrt.f32 %v1768_v42  ;;  %v1755_v46 = vpop.xlane.xlu0 %1754 }
 0x5d3   :  { %2334 = vrsqrt.f32 %v1769_v44  ;;  %v1757_v47 = vmax.f32 %v1755_v46, 1e-24 }
 0x5d5   :  { %2336 = vrsqrt.f32 %v1757_v47 }
 0x5de   :  { %v2331_v48 = vpop.eup %2330 }
 0x5df   :  { %v2333_v49 = vpop.eup %2332  ;;  %v1760_v51 = vmul.f32 %v2331_v48, %v1744_v33 }
 0x5e0   :  { %v2335_v50 = vpop.eup %2334  ;;  %v1772_v54 = vmul.f32 %v2333_v49, %v2644_v29 }
 0x5e1   :  { %v1773_v55 = vmul.f32 %v2335_v50, %v2646_v30 }
 0x5e2   :  { %v2337_v52 = vpop.eup %2336  ;;  %v1774_v56 = vmul.f32 %v1772_v54, %v1760_v51 }
 0x5e3   :  { %v1761_v53 = vmul.f32 %v2337_v52, %v1747_v37 }
 0x5e5   :  { %v1775_v26 = vmul.f32 %v1773_v55, %v1761_v53 }
 0x5e7   :  { %v1776_v57 = vadd.f32 %v1775_v26, %v1774_v56 }
 0x5e9   :  { %1777 = vadd.xlane.f32.xlu0 %v1776_v57 }
 0x672   :  { %v1778_v58 = vpop.xlane.xlu0 %1777 }
 0x673   :  { %v1779_v59 = vrot.slane %v1778_v58, 4 }
 0x675   :  { %v1780_v60 = vadd.f32 %v1779_v59, %v1778_v58 }
 0x677   :  { %v1781_v61 = vrot.slane %v1780_v60, 2 }
 0x679   :  { %v1782_v62 = vadd.f32 %v1781_v61, %v1780_v60 }
 0x67b   :  { %v1783_v63 = vrot.slane %v1782_v62, 1 }
 0x67d   :  { %v1784_v0 = vadd.f32 %v1783_v63, %v1782_v62 }
 0x67f   :  { %2043 = vpush %v1784_v0 }
 0x6b0   :  { %s2044_s6 = spop %2043 }
 0x6b1   :  { %s1786_s7 = smul.f32 2.0, %s2044_s6 }
 0x6b3   :  { %s1787_s19 = ssub.f32 32.0, %s1786_s7 }
 0x6b5   :  { %s1788_s20 = smul.f32 0.125, %s1787_s19 }
 0x6b7   :  { %1790 = sst [smem:[#allocation16]] %s1788_s20 }
 0x6b8   :  { %1798 = dma.smem_to_hbm %s2534_s24, 16, %s2674_s8, [#allocation4]  }
 0x6b9   :  { %2516 = dma.done.wait [#allocation4], 16  }
 0x6ba   :  { %2517 = vsyncadd [#allocation4], 4294967280 }
 0x6bb   :  { %1802 = sfence }
 0x6bc   :  { %1803 = vsyncpa [#allocation3], 1 }
 0x6bd   :  { %1804 = vsyncpa [#allocation6], 1 }
 0x6be   :  { %1805 = vsyncpa [#allocation9], 1 }
 0x6bf   :  { %1806 = vsyncpa [#allocation12], 1 }
 0x6c0   :  { %1807 = vsyncpa [#allocation15], 1 }
 0x6c1   :  { %1808 = vsyncpa [#allocation4], 1 }

</bundles_post_ra>
